<compile_context>
chip_gen: v5e
topology: v5e:2x2
jax: 0.10.0
libtpu: 0.0.40
codegen_flags: <defaults>
</compile_context>

<pallas_src>
import functools

import jax
import jax.numpy as jnp
from jax.experimental import pallas as pl
from jax.experimental.pallas import tpu as pltpu


def _decoder_kernel(xg_ref, whh_ref, wfc_ref, bfc_ref, h0_ref, c0_ref,
                    out_ref, hn_ref, cn_ref, hseq_ref, *, unroll):
    """LSTM recurrence with deferred (post-loop) Linear head.

    Gate columns are pre-permuted to (i, f, o, g).

    xg_ref  : (S, B, 4H)  precomputed x @ W_ih^T + (b_ih + b_hh), time-major
    whh_ref : (H, 4H)     W_hh^T (loop-invariant, VMEM resident)
    wfc_ref : (O, H)      fc weight (original PyTorch layout)
    bfc_ref : (1, O)      fc bias
    h0_ref, c0_ref : (B, H) initial state
    out_ref : (S, B, O)   fc output (time-major; transposed in wrapper)
    hn_ref, cn_ref : (B, H) final state
    hseq_ref: (S, B, H)   VMEM scratch holding the hidden sequence
    """
    S = xg_ref.shape[0]
    H = whh_ref.shape[0]
    O = wfc_ref.shape[0]

    # Loop-invariant weight load hoisted out of the recurrence.
    whh = whh_ref[...]                                  # (H, 4H)

    def step(t, carry):
        h, c = carry
        # Only the recurrent matmul + gate math stay on the serial chain.
        gates = xg_ref[t] + jnp.dot(h, whh, preferred_element_type=jnp.float32)
        sig = jax.nn.sigmoid(gates[:, :3 * H])          # i, f, o in one slab
        i_g = sig[:, 0 * H:1 * H]
        f_g = sig[:, 1 * H:2 * H]
        o_g = sig[:, 2 * H:3 * H]
        g_g = jnp.tanh(gates[:, 3 * H:4 * H])
        c_t = f_g * c + i_g * g_g
        h_t = o_g * jnp.tanh(c_t)
        hseq_ref[t] = h_t          # VMEM scratch only; no FC / HBM work here
        return (h_t, c_t)

    h0 = h0_ref[...].astype(jnp.float32)
    c0 = c0_ref[...].astype(jnp.float32)
    h_n, c_n = jax.lax.fori_loop(0, S, step, (h0, c0), unroll=unroll)

    hn_ref[...] = h_n.astype(hn_ref.dtype)
    cn_ref[...] = c_n.astype(cn_ref.dtype)

    # Deferred FC head (+ dropout == identity in eval mode): one pass over the
    # whole hidden sequence and a single output store.
    hseq = hseq_ref[...]                                # (S, B, H)
    wfc = wfc_ref[...]                                  # (O, H)
    bfc = bfc_ref[...]                                  # (1, O)
    cols = []
    for o in range(O):                                  # O is tiny; static loop
        w_row = wfc[o:o + 1, :]                         # (1, H), static slice
        cols.append(jnp.sum(hseq * w_row, axis=-1, keepdims=True))   # (S, B, 1)
    y = cols[0] if O == 1 else jnp.concatenate(cols, axis=-1)        # (S, B, O)
    out_ref[...] = (y + bfc).astype(out_ref.dtype)


def _reorder_gates_ifog(w):
    """Permute PyTorch LSTM gate blocks (i, f, g, o) -> (i, f, o, g)."""
    i, f, g, o = jnp.split(w, 4, axis=0)
    return jnp.concatenate([i, f, o, g], axis=0)


def decoder_forward(x, hidden, w_ih, w_hh, b_ih, b_hh, w_fc, b_fc):
    """Pallas forward matching the PyTorch Decoder (eval mode).

    x:      (B, S, I)  float32
    hidden: (h0, c0) each (1, B, H)
    w_ih: (4H, I)  w_hh: (4H, H)  b_ih, b_hh: (4H,)
    w_fc: (O, H)   b_fc: (O,)
    Returns (output, (h_n, c_n)) with output (B, S, O), h_n/c_n (1, B, H).
    """
    h0, c0 = hidden
    B, S, I = x.shape
    H = w_hh.shape[1]
    O = w_fc.shape[0]

    # Reorder gate blocks so the sigmoid gates are contiguous in the kernel.
    w_ih_r = _reorder_gates_ifog(w_ih)
    w_hh_r = _reorder_gates_ifog(w_hh)
    bias_r = _reorder_gates_ifog(b_ih + b_hh)

    # Hoisted, time-parallel input projection (one big XLA op) with the LSTM
    # biases folded in, produced directly in time-major layout.
    xg = (jnp.einsum('bsi,gi->sbg', x, w_ih_r) + bias_r).astype(jnp.float32)

    whh_t = jnp.transpose(w_hh_r)                       # (H, 4H)
    bfc2d = b_fc.reshape(1, O)                          # (1, O)
    h0_2d = h0.reshape(B, H).astype(jnp.float32)
    c0_2d = c0.reshape(B, H).astype(jnp.float32)

    unroll = True if S <= 32 else 8                     # never unroll=False
    kernel = functools.partial(_decoder_kernel, unroll=unroll)

    out_shapes = (
        jax.ShapeDtypeStruct((S, B, O), x.dtype),       # fc output (time-major)
        jax.ShapeDtypeStruct((B, H), x.dtype),          # h_n
        jax.ShapeDtypeStruct((B, H), x.dtype),          # c_n
    )

    grid_spec = pltpu.PrefetchScalarGridSpec(
        num_scalar_prefetch=0,
        grid=(1,),                                      # whole sequence in one step
        in_specs=[
            pl.BlockSpec((S, B, 4 * H), lambda i: (0, 0, 0)),   # xg
            pl.BlockSpec((H, 4 * H), lambda i: (0, 0)),         # W_hh^T
            pl.BlockSpec((O, H), lambda i: (0, 0)),             # W_fc
            pl.BlockSpec((1, O), lambda i: (0, 0)),             # b_fc
            pl.BlockSpec((B, H), lambda i: (0, 0)),             # h0
            pl.BlockSpec((B, H), lambda i: (0, 0)),             # c0
        ],
        out_specs=[
            pl.BlockSpec((S, B, O), lambda i: (0, 0, 0)),
            pl.BlockSpec((B, H), lambda i: (0, 0)),
            pl.BlockSpec((B, H), lambda i: (0, 0)),
        ],
        scratch_shapes=[pltpu.VMEM((S, B, H), jnp.float32)],    # hidden sequence
    )

    out_tm, h_n, c_n = pl.pallas_call(
        kernel,
        out_shape=out_shapes,
        grid_spec=grid_spec,
        compiler_params=pltpu.CompilerParams(
            dimension_semantics=("arbitrary",)),
    )(xg, whh_t, w_fc, bfc2d, h0_2d, c0_2d)

    # Only the tiny (S, B, O) head output is transposed here; the (B, S, H)
    # hidden activations never left VMEM.
    output = jnp.transpose(out_tm, (1, 0, 2))           # (B, S, O)
    return output, (h_n[None, ...], c_n[None, ...])


def _reference_decoder(x, h0, c0, w_ih, w_hh, b_ih, b_hh, w_fc, b_fc):
    """Pure-JAX reference matching PyTorch Decoder semantics (eval mode)."""
    B, S, I = x.shape
    H = w_hh.shape[1]
    bias = b_ih + b_hh

    def step(carry, x_t):
        h, c = carry
        gates = x_t @ w_ih.T + h @ w_hh.T + bias
        i = jax.nn.sigmoid(gates[:, 0 * H:1 * H])
        f = jax.nn.sigmoid(gates[:, 1 * H:2 * H])
        g = jnp.tanh(gates[:, 2 * H:3 * H])
        o = jax.nn.sigmoid(gates[:, 3 * H:4 * H])
        c = f * c + i * g
        h = o * jnp.tanh(c)
        return (h, c), h

    (hT, cT), hs = jax.lax.scan(step, (h0[0], c0[0]), jnp.transpose(x, (1, 0, 2)))
    lstm_out = jnp.transpose(hs, (1, 0, 2))             # (B, S, H)
    y = lstm_out @ w_fc.T + b_fc                        # dropout = identity (eval)
    return y, (hT[None], cT[None])


if __name__ == "__main__":
    # Shapes consistent with the module: input_size=1, hidden_size=50, output_size=1.
    B, S = 2, 8
    I, H, O = 1, 50, 1

    key = jax.random.PRNGKey(0)
    keys = jax.random.split(key, 9)

    x = jax.random.normal(keys[0], (B, S, I), dtype=jnp.float32)

    bound = 1.0 / (H ** 0.5)
    w_ih = jax.random.uniform(keys[1], (4 * H, I), jnp.float32, -bound, bound)
    w_hh = jax.random.uniform(keys[2], (4 * H, H), jnp.float32, -bound, bound)
    b_ih = jax.random.uniform(keys[3], (4 * H,), jnp.float32, -bound, bound)
    b_hh = jax.random.uniform(keys[4], (4 * H,), jnp.float32, -bound, bound)
    w_fc = jax.random.uniform(keys[5], (O, H), jnp.float32, -bound, bound)
    b_fc = jax.random.uniform(keys[6], (O,), jnp.float32, -bound, bound)

    h0 = jax.random.normal(keys[7], (1, B, H), dtype=jnp.float32)
    c0 = jax.random.normal(keys[8], (1, B, H), dtype=jnp.float32)

    out, (h_n, c_n) = decoder_forward(x, (h0, c0), w_ih, w_hh, b_ih, b_hh, w_fc, b_fc)
    jax.block_until_ready((out, h_n, c_n))

    ref_out, (ref_h, ref_c) = _reference_decoder(x, h0, c0, w_ih, w_hh,
                                                 b_ih, b_hh, w_fc, b_fc)
    assert out.shape == (B, S, O)
    assert h_n.shape == (1, B, H) and c_n.shape == (1, B, H)
    assert jnp.allclose(out, ref_out, atol=3e-5, rtol=1e-5)
    assert jnp.allclose(h_n, ref_h, atol=3e-5, rtol=1e-5)
    assert jnp.allclose(c_n, ref_c, atol=3e-5, rtol=1e-5)

    print("KERNEL_OK")
</pallas_src>

<mosaic_0001>
module attributes {stable_mosaic.version = 11 : i64} {
  func.func @_decoder_kernel(%arg0: i32, %arg1: memref<8x2x200xf32, #tpu.memory_space<vmem>>, %arg2: memref<50x200xf32, #tpu.memory_space<vmem>>, %arg3: memref<1x50xf32, #tpu.memory_space<vmem>>, %arg4: memref<1x1xf32, #tpu.memory_space<vmem>>, %arg5: memref<2x50xf32, #tpu.memory_space<vmem>>, %arg6: memref<2x50xf32, #tpu.memory_space<vmem>>, %arg7: memref<8x2x1xf32, #tpu.memory_space<vmem>>, %arg8: memref<2x50xf32, #tpu.memory_space<vmem>>, %arg9: memref<2x50xf32, #tpu.memory_space<vmem>>, %arg10: memref<8x2x50xf32, #tpu.memory_space<vmem>>) attributes {dimension_semantics = [#tpu.dimension_semantics<arbitrary>], iteration_bounds = array<i64: 1>, scalar_prefetch = 0 : i64, scratch_operands = 1 : i64, tpu.core_type = #tpu.core_type<tc>, window_params = [{pipeline_mode = #tpu.pipeline_mode<synchronous>, transform_indices = @transform_0, window_bounds = array<i64: 8, 2, 200>}, {pipeline_mode = #tpu.pipeline_mode<synchronous>, transform_indices = @transform_1, window_bounds = array<i64: 50, 200>}, {pipeline_mode = #tpu.pipeline_mode<synchronous>, transform_indices = @transform_2, window_bounds = array<i64: 1, 50>}, {pipeline_mode = #tpu.pipeline_mode<synchronous>, transform_indices = @transform_3, window_bounds = array<i64: 1, 1>}, {pipeline_mode = #tpu.pipeline_mode<synchronous>, transform_indices = @transform_4, window_bounds = array<i64: 2, 50>}, {pipeline_mode = #tpu.pipeline_mode<synchronous>, transform_indices = @transform_5, window_bounds = array<i64: 2, 50>}, {pipeline_mode = #tpu.pipeline_mode<synchronous>, transform_indices = @transform_6, window_bounds = array<i64: 8, 2, 1>}, {pipeline_mode = #tpu.pipeline_mode<synchronous>, transform_indices = @transform_7, window_bounds = array<i64: 2, 50>}, {pipeline_mode = #tpu.pipeline_mode<synchronous>, transform_indices = @transform_8, window_bounds = array<i64: 2, 50>}]} {
    %c0 = arith.constant 0 : index
    %c0_0 = arith.constant 0 : index
    %0 = vector.load %arg2[%c0, %c0_0] : memref<50x200xf32, #tpu.memory_space<vmem>>, vector<50x200xf32>
    %c0_1 = arith.constant 0 : index
    %c0_2 = arith.constant 0 : index
    %1 = vector.load %arg5[%c0_1, %c0_2] : memref<2x50xf32, #tpu.memory_space<vmem>>, vector<2x50xf32>
    %c0_3 = arith.constant 0 : index
    %c0_4 = arith.constant 0 : index
    %2 = vector.load %arg6[%c0_3, %c0_4] : memref<2x50xf32, #tpu.memory_space<vmem>>, vector<2x50xf32>
    %c0_i32 = arith.constant 0 : i32
    %3 = arith.index_cast %c0_i32 : i32 to index
    %c0_5 = arith.constant 0 : index
    %c0_6 = arith.constant 0 : index
    %4 = vector.load %arg1[%3, %c0_5, %c0_6] : memref<8x2x200xf32, #tpu.memory_space<vmem>>, vector<1x2x200xf32>
    %5 = vector.shape_cast %4 : vector<1x2x200xf32> to vector<2x200xf32>
    %cst = arith.constant dense<0.000000e+00> : vector<2x200xf32>
    %6 = tpu.matmul %1, %0, %cst {dimension_numbers = #tpu.dot_dimension_numbers<[1], [0], [0], [1], [0, 0, 1, 1], [], []>} : vector<2x50xf32>, vector<50x200xf32>, vector<2x200xf32> -> vector<2x200xf32>
    %7 = arith.addf %5, %6 : vector<2x200xf32>
    %8 = vector.extract_strided_slice %7 {offsets = [0, 0], sizes = [2, 150], strides = [1, 1]} : vector<2x200xf32> to vector<2x150xf32>
    %9 = arith.negf %8 : vector<2x150xf32>
    %10 = math.exp %9 : vector<2x150xf32>
    %cst_7 = arith.constant 1.000000e+00 : f32
    %11 = vector.broadcast %cst_7 : f32 to vector<2x150xf32>
    %12 = arith.addf %11, %10 : vector<2x150xf32>
    %13 = arith.divf %11, %12 : vector<2x150xf32>
    %14 = vector.extract_strided_slice %13 {offsets = [0, 0], sizes = [2, 50], strides = [1, 1]} : vector<2x150xf32> to vector<2x50xf32>
    %15 = vector.extract_strided_slice %13 {offsets = [0, 50], sizes = [2, 50], strides = [1, 1]} : vector<2x150xf32> to vector<2x50xf32>
    %16 = vector.extract_strided_slice %13 {offsets = [0, 100], sizes = [2, 50], strides = [1, 1]} : vector<2x150xf32> to vector<2x50xf32>
    %17 = vector.extract_strided_slice %7 {offsets = [0, 150], sizes = [2, 50], strides = [1, 1]} : vector<2x200xf32> to vector<2x50xf32>
    %18 = math.tanh %17 : vector<2x50xf32>
    %19 = arith.mulf %15, %2 : vector<2x50xf32>
    %20 = arith.mulf %14, %18 : vector<2x50xf32>
    %21 = arith.addf %19, %20 : vector<2x50xf32>
    %22 = math.tanh %21 : vector<2x50xf32>
    %23 = arith.mulf %16, %22 : vector<2x50xf32>
    %24 = arith.index_cast %c0_i32 : i32 to index
    %c0_8 = arith.constant 0 : index
    %c0_9 = arith.constant 0 : index
    %25 = vector.load %arg10[%24, %c0_8, %c0_9] : memref<8x2x50xf32, #tpu.memory_space<vmem>>, vector<1x2x50xf32>
    %26 = vector.shape_cast %25 : vector<1x2x50xf32> to vector<2x50xf32>
    %27 = vector.shape_cast %23 : vector<2x50xf32> to vector<1x2x50xf32>
    tpu.vector_store %arg10[%24, %c0_8, %c0_9], %27 {strides = array<i32>} : memref<8x2x50xf32, #tpu.memory_space<vmem>>, vector<1x2x50xf32>,
    %c1_i32 = arith.constant 1 : i32
    %28 = arith.index_cast %c1_i32 : i32 to index
    %c0_10 = arith.constant 0 : index
    %c0_11 = arith.constant 0 : index
    %29 = vector.load %arg1[%28, %c0_10, %c0_11] : memref<8x2x200xf32, #tpu.memory_space<vmem>>, vector<1x2x200xf32>
    %30 = vector.shape_cast %29 : vector<1x2x200xf32> to vector<2x200xf32>
    %cst_12 = arith.constant dense<0.000000e+00> : vector<2x200xf32>
    %31 = tpu.matmul %23, %0, %cst_12 {dimension_numbers = #tpu.dot_dimension_numbers<[1], [0], [0], [1], [0, 0, 1, 1], [], []>} : vector<2x50xf32>, vector<50x200xf32>, vector<2x200xf32> -> vector<2x200xf32>
    %32 = arith.addf %30, %31 : vector<2x200xf32>
    %33 = vector.extract_strided_slice %32 {offsets = [0, 0], sizes = [2, 150], strides = [1, 1]} : vector<2x200xf32> to vector<2x150xf32>
    %34 = arith.negf %33 : vector<2x150xf32>
    %35 = math.exp %34 : vector<2x150xf32>
    %cst_13 = arith.constant 1.000000e+00 : f32
    %36 = vector.broadcast %cst_13 : f32 to vector<2x150xf32>
    %37 = arith.addf %36, %35 : vector<2x150xf32>
    %38 = arith.divf %36, %37 : vector<2x150xf32>
    %39 = vector.extract_strided_slice %38 {offsets = [0, 0], sizes = [2, 50], strides = [1, 1]} : vector<2x150xf32> to vector<2x50xf32>
    %40 = vector.extract_strided_slice %38 {offsets = [0, 50], sizes = [2, 50], strides = [1, 1]} : vector<2x150xf32> to vector<2x50xf32>
    %41 = vector.extract_strided_slice %38 {offsets = [0, 100], sizes = [2, 50], strides = [1, 1]} : vector<2x150xf32> to vector<2x50xf32>
    %42 = vector.extract_strided_slice %32 {offsets = [0, 150], sizes = [2, 50], strides = [1, 1]} : vector<2x200xf32> to vector<2x50xf32>
    %43 = math.tanh %42 : vector<2x50xf32>
    %44 = arith.mulf %40, %21 : vector<2x50xf32>
    %45 = arith.mulf %39, %43 : vector<2x50xf32>
    %46 = arith.addf %44, %45 : vector<2x50xf32>
    %47 = math.tanh %46 : vector<2x50xf32>
    %48 = arith.mulf %41, %47 : vector<2x50xf32>
    %49 = arith.index_cast %c1_i32 : i32 to index
    %c0_14 = arith.constant 0 : index
    %c0_15 = arith.constant 0 : index
    %50 = vector.load %arg10[%49, %c0_14, %c0_15] : memref<8x2x50xf32, #tpu.memory_space<vmem>>, vector<1x2x50xf32>
    %51 = vector.shape_cast %50 : vector<1x2x50xf32> to vector<2x50xf32>
    %52 = vector.shape_cast %48 : vector<2x50xf32> to vector<1x2x50xf32>
    tpu.vector_store %arg10[%49, %c0_14, %c0_15], %52 {strides = array<i32>} : memref<8x2x50xf32, #tpu.memory_space<vmem>>, vector<1x2x50xf32>,
    %c2_i32 = arith.constant 2 : i32
    %53 = arith.index_cast %c2_i32 : i32 to index
    %c0_16 = arith.constant 0 : index
    %c0_17 = arith.constant 0 : index
    %54 = vector.load %arg1[%53, %c0_16, %c0_17] : memref<8x2x200xf32, #tpu.memory_space<vmem>>, vector<1x2x200xf32>
    %55 = vector.shape_cast %54 : vector<1x2x200xf32> to vector<2x200xf32>
    %cst_18 = arith.constant dense<0.000000e+00> : vector<2x200xf32>
    %56 = tpu.matmul %48, %0, %cst_18 {dimension_numbers = #tpu.dot_dimension_numbers<[1], [0], [0], [1], [0, 0, 1, 1], [], []>} : vector<2x50xf32>, vector<50x200xf32>, vector<2x200xf32> -> vector<2x200xf32>
    %57 = arith.addf %55, %56 : vector<2x200xf32>
    %58 = vector.extract_strided_slice %57 {offsets = [0, 0], sizes = [2, 150], strides = [1, 1]} : vector<2x200xf32> to vector<2x150xf32>
    %59 = arith.negf %58 : vector<2x150xf32>
    %60 = math.exp %59 : vector<2x150xf32>
    %cst_19 = arith.constant 1.000000e+00 : f32
    %61 = vector.broadcast %cst_19 : f32 to vector<2x150xf32>
    %62 = arith.addf %61, %60 : vector<2x150xf32>
    %63 = arith.divf %61, %62 : vector<2x150xf32>
    %64 = vector.extract_strided_slice %63 {offsets = [0, 0], sizes = [2, 50], strides = [1, 1]} : vector<2x150xf32> to vector<2x50xf32>
    %65 = vector.extract_strided_slice %63 {offsets = [0, 50], sizes = [2, 50], strides = [1, 1]} : vector<2x150xf32> to vector<2x50xf32>
    %66 = vector.extract_strided_slice %63 {offsets = [0, 100], sizes = [2, 50], strides = [1, 1]} : vector<2x150xf32> to vector<2x50xf32>
    %67 = vector.extract_strided_slice %57 {offsets = [0, 150], sizes = [2, 50], strides = [1, 1]} : vector<2x200xf32> to vector<2x50xf32>
    %68 = math.tanh %67 : vector<2x50xf32>
    %69 = arith.mulf %65, %46 : vector<2x50xf32>
    %70 = arith.mulf %64, %68 : vector<2x50xf32>
    %71 = arith.addf %69, %70 : vector<2x50xf32>
    %72 = math.tanh %71 : vector<2x50xf32>
    %73 = arith.mulf %66, %72 : vector<2x50xf32>
    %74 = arith.index_cast %c2_i32 : i32 to index
    %c0_20 = arith.constant 0 : index
    %c0_21 = arith.constant 0 : index
    %75 = vector.load %arg10[%74, %c0_20, %c0_21] : memref<8x2x50xf32, #tpu.memory_space<vmem>>, vector<1x2x50xf32>
    %76 = vector.shape_cast %75 : vector<1x2x50xf32> to vector<2x50xf32>
    %77 = vector.shape_cast %73 : vector<2x50xf32> to vector<1x2x50xf32>
    tpu.vector_store %arg10[%74, %c0_20, %c0_21], %77 {strides = array<i32>} : memref<8x2x50xf32, #tpu.memory_space<vmem>>, vector<1x2x50xf32>,
    %c3_i32 = arith.constant 3 : i32
    %78 = arith.index_cast %c3_i32 : i32 to index
    %c0_22 = arith.constant 0 : index
    %c0_23 = arith.constant 0 : index
    %79 = vector.load %arg1[%78, %c0_22, %c0_23] : memref<8x2x200xf32, #tpu.memory_space<vmem>>, vector<1x2x200xf32>
    %80 = vector.shape_cast %79 : vector<1x2x200xf32> to vector<2x200xf32>
    %cst_24 = arith.constant dense<0.000000e+00> : vector<2x200xf32>
    %81 = tpu.matmul %73, %0, %cst_24 {dimension_numbers = #tpu.dot_dimension_numbers<[1], [0], [0], [1], [0, 0, 1, 1], [], []>} : vector<2x50xf32>, vector<50x200xf32>, vector<2x200xf32> -> vector<2x200xf32>
    %82 = arith.addf %80, %81 : vector<2x200xf32>
    %83 = vector.extract_strided_slice %82 {offsets = [0, 0], sizes = [2, 150], strides = [1, 1]} : vector<2x200xf32> to vector<2x150xf32>
    %84 = arith.negf %83 : vector<2x150xf32>
    %85 = math.exp %84 : vector<2x150xf32>
    %cst_25 = arith.constant 1.000000e+00 : f32
    %86 = vector.broadcast %cst_25 : f32 to vector<2x150xf32>
    %87 = arith.addf %86, %85 : vector<2x150xf32>
    %88 = arith.divf %86, %87 : vector<2x150xf32>
    %89 = vector.extract_strided_slice %88 {offsets = [0, 0], sizes = [2, 50], strides = [1, 1]} : vector<2x150xf32> to vector<2x50xf32>
    %90 = vector.extract_strided_slice %88 {offsets = [0, 50], sizes = [2, 50], strides = [1, 1]} : vector<2x150xf32> to vector<2x50xf32>
    %91 = vector.extract_strided_slice %88 {offsets = [0, 100], sizes = [2, 50], strides = [1, 1]} : vector<2x150xf32> to vector<2x50xf32>
    %92 = vector.extract_strided_slice %82 {offsets = [0, 150], sizes = [2, 50], strides = [1, 1]} : vector<2x200xf32> to vector<2x50xf32>
    %93 = math.tanh %92 : vector<2x50xf32>
    %94 = arith.mulf %90, %71 : vector<2x50xf32>
    %95 = arith.mulf %89, %93 : vector<2x50xf32>
    %96 = arith.addf %94, %95 : vector<2x50xf32>
    %97 = math.tanh %96 : vector<2x50xf32>
    %98 = arith.mulf %91, %97 : vector<2x50xf32>
    %99 = arith.index_cast %c3_i32 : i32 to index
    %c0_26 = arith.constant 0 : index
    %c0_27 = arith.constant 0 : index
    %100 = vector.load %arg10[%99, %c0_26, %c0_27] : memref<8x2x50xf32, #tpu.memory_space<vmem>>, vector<1x2x50xf32>
    %101 = vector.shape_cast %100 : vector<1x2x50xf32> to vector<2x50xf32>
    %102 = vector.shape_cast %98 : vector<2x50xf32> to vector<1x2x50xf32>
    tpu.vector_store %arg10[%99, %c0_26, %c0_27], %102 {strides = array<i32>} : memref<8x2x50xf32, #tpu.memory_space<vmem>>, vector<1x2x50xf32>,
    %c4_i32 = arith.constant 4 : i32
    %103 = arith.index_cast %c4_i32 : i32 to index
    %c0_28 = arith.constant 0 : index
    %c0_29 = arith.constant 0 : index
    %104 = vector.load %arg1[%103, %c0_28, %c0_29] : memref<8x2x200xf32, #tpu.memory_space<vmem>>, vector<1x2x200xf32>
    %105 = vector.shape_cast %104 : vector<1x2x200xf32> to vector<2x200xf32>
    %cst_30 = arith.constant dense<0.000000e+00> : vector<2x200xf32>
    %106 = tpu.matmul %98, %0, %cst_30 {dimension_numbers = #tpu.dot_dimension_numbers<[1], [0], [0], [1], [0, 0, 1, 1], [], []>} : vector<2x50xf32>, vector<50x200xf32>, vector<2x200xf32> -> vector<2x200xf32>
    %107 = arith.addf %105, %106 : vector<2x200xf32>
    %108 = vector.extract_strided_slice %107 {offsets = [0, 0], sizes = [2, 150], strides = [1, 1]} : vector<2x200xf32> to vector<2x150xf32>
    %109 = arith.negf %108 : vector<2x150xf32>
    %110 = math.exp %109 : vector<2x150xf32>
    %cst_31 = arith.constant 1.000000e+00 : f32
    %111 = vector.broadcast %cst_31 : f32 to vector<2x150xf32>
    %112 = arith.addf %111, %110 : vector<2x150xf32>
    %113 = arith.divf %111, %112 : vector<2x150xf32>
    %114 = vector.extract_strided_slice %113 {offsets = [0, 0], sizes = [2, 50], strides = [1, 1]} : vector<2x150xf32> to vector<2x50xf32>
    %115 = vector.extract_strided_slice %113 {offsets = [0, 50], sizes = [2, 50], strides = [1, 1]} : vector<2x150xf32> to vector<2x50xf32>
    %116 = vector.extract_strided_slice %113 {offsets = [0, 100], sizes = [2, 50], strides = [1, 1]} : vector<2x150xf32> to vector<2x50xf32>
    %117 = vector.extract_strided_slice %107 {offsets = [0, 150], sizes = [2, 50], strides = [1, 1]} : vector<2x200xf32> to vector<2x50xf32>
    %118 = math.tanh %117 : vector<2x50xf32>
    %119 = arith.mulf %115, %96 : vector<2x50xf32>
    %120 = arith.mulf %114, %118 : vector<2x50xf32>
    %121 = arith.addf %119, %120 : vector<2x50xf32>
    %122 = math.tanh %121 : vector<2x50xf32>
    %123 = arith.mulf %116, %122 : vector<2x50xf32>
    %124 = arith.index_cast %c4_i32 : i32 to index
    %c0_32 = arith.constant 0 : index
    %c0_33 = arith.constant 0 : index
    %125 = vector.load %arg10[%124, %c0_32, %c0_33] : memref<8x2x50xf32, #tpu.memory_space<vmem>>, vector<1x2x50xf32>
    %126 = vector.shape_cast %125 : vector<1x2x50xf32> to vector<2x50xf32>
    %127 = vector.shape_cast %123 : vector<2x50xf32> to vector<1x2x50xf32>
    tpu.vector_store %arg10[%124, %c0_32, %c0_33], %127 {strides = array<i32>} : memref<8x2x50xf32, #tpu.memory_space<vmem>>, vector<1x2x50xf32>,
    %c5_i32 = arith.constant 5 : i32
    %128 = arith.index_cast %c5_i32 : i32 to index
    %c0_34 = arith.constant 0 : index
    %c0_35 = arith.constant 0 : index
    %129 = vector.load %arg1[%128, %c0_34, %c0_35] : memref<8x2x200xf32, #tpu.memory_space<vmem>>, vector<1x2x200xf32>
    %130 = vector.shape_cast %129 : vector<1x2x200xf32> to vector<2x200xf32>
    %cst_36 = arith.constant dense<0.000000e+00> : vector<2x200xf32>
    %131 = tpu.matmul %123, %0, %cst_36 {dimension_numbers = #tpu.dot_dimension_numbers<[1], [0], [0], [1], [0, 0, 1, 1], [], []>} : vector<2x50xf32>, vector<50x200xf32>, vector<2x200xf32> -> vector<2x200xf32>
    %132 = arith.addf %130, %131 : vector<2x200xf32>
    %133 = vector.extract_strided_slice %132 {offsets = [0, 0], sizes = [2, 150], strides = [1, 1]} : vector<2x200xf32> to vector<2x150xf32>
    %134 = arith.negf %133 : vector<2x150xf32>
    %135 = math.exp %134 : vector<2x150xf32>
    %cst_37 = arith.constant 1.000000e+00 : f32
    %136 = vector.broadcast %cst_37 : f32 to vector<2x150xf32>
    %137 = arith.addf %136, %135 : vector<2x150xf32>
    %138 = arith.divf %136, %137 : vector<2x150xf32>
    %139 = vector.extract_strided_slice %138 {offsets = [0, 0], sizes = [2, 50], strides = [1, 1]} : vector<2x150xf32> to vector<2x50xf32>
    %140 = vector.extract_strided_slice %138 {offsets = [0, 50], sizes = [2, 50], strides = [1, 1]} : vector<2x150xf32> to vector<2x50xf32>
    %141 = vector.extract_strided_slice %138 {offsets = [0, 100], sizes = [2, 50], strides = [1, 1]} : vector<2x150xf32> to vector<2x50xf32>
    %142 = vector.extract_strided_slice %132 {offsets = [0, 150], sizes = [2, 50], strides = [1, 1]} : vector<2x200xf32> to vector<2x50xf32>
    %143 = math.tanh %142 : vector<2x50xf32>
    %144 = arith.mulf %140, %121 : vector<2x50xf32>
    %145 = arith.mulf %139, %143 : vector<2x50xf32>
    %146 = arith.addf %144, %145 : vector<2x50xf32>
    %147 = math.tanh %146 : vector<2x50xf32>
    %148 = arith.mulf %141, %147 : vector<2x50xf32>
    %149 = arith.index_cast %c5_i32 : i32 to index
    %c0_38 = arith.constant 0 : index
    %c0_39 = arith.constant 0 : index
    %150 = vector.load %arg10[%149, %c0_38, %c0_39] : memref<8x2x50xf32, #tpu.memory_space<vmem>>, vector<1x2x50xf32>
    %151 = vector.shape_cast %150 : vector<1x2x50xf32> to vector<2x50xf32>
    %152 = vector.shape_cast %148 : vector<2x50xf32> to vector<1x2x50xf32>
    tpu.vector_store %arg10[%149, %c0_38, %c0_39], %152 {strides = array<i32>} : memref<8x2x50xf32, #tpu.memory_space<vmem>>, vector<1x2x50xf32>,
    %c6_i32 = arith.constant 6 : i32
    %153 = arith.index_cast %c6_i32 : i32 to index
    %c0_40 = arith.constant 0 : index
    %c0_41 = arith.constant 0 : index
    %154 = vector.load %arg1[%153, %c0_40, %c0_41] : memref<8x2x200xf32, #tpu.memory_space<vmem>>, vector<1x2x200xf32>
    %155 = vector.shape_cast %154 : vector<1x2x200xf32> to vector<2x200xf32>
    %cst_42 = arith.constant dense<0.000000e+00> : vector<2x200xf32>
    %156 = tpu.matmul %148, %0, %cst_42 {dimension_numbers = #tpu.dot_dimension_numbers<[1], [0], [0], [1], [0, 0, 1, 1], [], []>} : vector<2x50xf32>, vector<50x200xf32>, vector<2x200xf32> -> vector<2x200xf32>
    %157 = arith.addf %155, %156 : vector<2x200xf32>
    %158 = vector.extract_strided_slice %157 {offsets = [0, 0], sizes = [2, 150], strides = [1, 1]} : vector<2x200xf32> to vector<2x150xf32>
    %159 = arith.negf %158 : vector<2x150xf32>
    %160 = math.exp %159 : vector<2x150xf32>
    %cst_43 = arith.constant 1.000000e+00 : f32
    %161 = vector.broadcast %cst_43 : f32 to vector<2x150xf32>
    %162 = arith.addf %161, %160 : vector<2x150xf32>
    %163 = arith.divf %161, %162 : vector<2x150xf32>
    %164 = vector.extract_strided_slice %163 {offsets = [0, 0], sizes = [2, 50], strides = [1, 1]} : vector<2x150xf32> to vector<2x50xf32>
    %165 = vector.extract_strided_slice %163 {offsets = [0, 50], sizes = [2, 50], strides = [1, 1]} : vector<2x150xf32> to vector<2x50xf32>
    %166 = vector.extract_strided_slice %163 {offsets = [0, 100], sizes = [2, 50], strides = [1, 1]} : vector<2x150xf32> to vector<2x50xf32>
    %167 = vector.extract_strided_slice %157 {offsets = [0, 150], sizes = [2, 50], strides = [1, 1]} : vector<2x200xf32> to vector<2x50xf32>
    %168 = math.tanh %167 : vector<2x50xf32>
    %169 = arith.mulf %165, %146 : vector<2x50xf32>
    %170 = arith.mulf %164, %168 : vector<2x50xf32>
    %171 = arith.addf %169, %170 : vector<2x50xf32>
    %172 = math.tanh %171 : vector<2x50xf32>
    %173 = arith.mulf %166, %172 : vector<2x50xf32>
    %174 = arith.index_cast %c6_i32 : i32 to index
    %c0_44 = arith.constant 0 : index
    %c0_45 = arith.constant 0 : index
    %175 = vector.load %arg10[%174, %c0_44, %c0_45] : memref<8x2x50xf32, #tpu.memory_space<vmem>>, vector<1x2x50xf32>
    %176 = vector.shape_cast %175 : vector<1x2x50xf32> to vector<2x50xf32>
    %177 = vector.shape_cast %173 : vector<2x50xf32> to vector<1x2x50xf32>
    tpu.vector_store %arg10[%174, %c0_44, %c0_45], %177 {strides = array<i32>} : memref<8x2x50xf32, #tpu.memory_space<vmem>>, vector<1x2x50xf32>,
    %c7_i32 = arith.constant 7 : i32
    %178 = arith.index_cast %c7_i32 : i32 to index
    %c0_46 = arith.constant 0 : index
    %c0_47 = arith.constant 0 : index
    %179 = vector.load %arg1[%178, %c0_46, %c0_47] : memref<8x2x200xf32, #tpu.memory_space<vmem>>, vector<1x2x200xf32>
    %180 = vector.shape_cast %179 : vector<1x2x200xf32> to vector<2x200xf32>
    %cst_48 = arith.constant dense<0.000000e+00> : vector<2x200xf32>
    %181 = tpu.matmul %173, %0, %cst_48 {dimension_numbers = #tpu.dot_dimension_numbers<[1], [0], [0], [1], [0, 0, 1, 1], [], []>} : vector<2x50xf32>, vector<50x200xf32>, vector<2x200xf32> -> vector<2x200xf32>
    %182 = arith.addf %180, %181 : vector<2x200xf32>
    %183 = vector.extract_strided_slice %182 {offsets = [0, 0], sizes = [2, 150], strides = [1, 1]} : vector<2x200xf32> to vector<2x150xf32>
    %184 = arith.negf %183 : vector<2x150xf32>
    %185 = math.exp %184 : vector<2x150xf32>
    %cst_49 = arith.constant 1.000000e+00 : f32
    %186 = vector.broadcast %cst_49 : f32 to vector<2x150xf32>
    %187 = arith.addf %186, %185 : vector<2x150xf32>
    %188 = arith.divf %186, %187 : vector<2x150xf32>
    %189 = vector.extract_strided_slice %188 {offsets = [0, 0], sizes = [2, 50], strides = [1, 1]} : vector<2x150xf32> to vector<2x50xf32>
    %190 = vector.extract_strided_slice %188 {offsets = [0, 50], sizes = [2, 50], strides = [1, 1]} : vector<2x150xf32> to vector<2x50xf32>
    %191 = vector.extract_strided_slice %188 {offsets = [0, 100], sizes = [2, 50], strides = [1, 1]} : vector<2x150xf32> to vector<2x50xf32>
    %192 = vector.extract_strided_slice %182 {offsets = [0, 150], sizes = [2, 50], strides = [1, 1]} : vector<2x200xf32> to vector<2x50xf32>
    %193 = math.tanh %192 : vector<2x50xf32>
    %194 = arith.mulf %190, %171 : vector<2x50xf32>
    %195 = arith.mulf %189, %193 : vector<2x50xf32>
    %196 = arith.addf %194, %195 : vector<2x50xf32>
    %197 = math.tanh %196 : vector<2x50xf32>
    %198 = arith.mulf %191, %197 : vector<2x50xf32>
    %199 = arith.index_cast %c7_i32 : i32 to index
    %c0_50 = arith.constant 0 : index
    %c0_51 = arith.constant 0 : index
    %200 = vector.load %arg10[%199, %c0_50, %c0_51] : memref<8x2x50xf32, #tpu.memory_space<vmem>>, vector<1x2x50xf32>
    %201 = vector.shape_cast %200 : vector<1x2x50xf32> to vector<2x50xf32>
    %202 = vector.shape_cast %198 : vector<2x50xf32> to vector<1x2x50xf32>
    tpu.vector_store %arg10[%199, %c0_50, %c0_51], %202 {strides = array<i32>} : memref<8x2x50xf32, #tpu.memory_space<vmem>>, vector<1x2x50xf32>,
    %c8_i32 = arith.constant 8 : i32
    %c0_52 = arith.constant 0 : index
    %c0_53 = arith.constant 0 : index
    %203 = vector.load %arg8[%c0_52, %c0_53] : memref<2x50xf32, #tpu.memory_space<vmem>>, vector<2x50xf32>
    tpu.vector_store %arg8[%c0_52, %c0_53], %198 {strides = array<i32>} : memref<2x50xf32, #tpu.memory_space<vmem>>, vector<2x50xf32>,
    %c0_54 = arith.constant 0 : index
    %c0_55 = arith.constant 0 : index
    %204 = vector.load %arg9[%c0_54, %c0_55] : memref<2x50xf32, #tpu.memory_space<vmem>>, vector<2x50xf32>
    tpu.vector_store %arg9[%c0_54, %c0_55], %196 {strides = array<i32>} : memref<2x50xf32, #tpu.memory_space<vmem>>, vector<2x50xf32>,
    %c0_56 = arith.constant 0 : index
    %c0_57 = arith.constant 0 : index
    %c0_58 = arith.constant 0 : index
    %205 = vector.load %arg10[%c0_56, %c0_57, %c0_58] : memref<8x2x50xf32, #tpu.memory_space<vmem>>, vector<8x2x50xf32>
    %c0_59 = arith.constant 0 : index
    %c0_60 = arith.constant 0 : index
    %206 = vector.load %arg3[%c0_59, %c0_60] : memref<1x50xf32, #tpu.memory_space<vmem>>, vector<1x50xf32>
    %c0_61 = arith.constant 0 : index
    %c0_62 = arith.constant 0 : index
    %207 = vector.load %arg4[%c0_61, %c0_62] : memref<1x1xf32, #tpu.memory_space<vmem>>, vector<1x1xf32>
    %208 = vector.shape_cast %206 : vector<1x50xf32> to vector<1x1x50xf32>
    %209 = vector.broadcast %208 : vector<1x1x50xf32> to vector<8x2x50xf32>
    %210 = arith.mulf %205, %209 : vector<8x2x50xf32>
    %cst_63 = arith.constant dense<0.000000e+00> : vector<8x2xf32>
    %211 = vector.multi_reduction <add>, %210, %cst_63 [2] : vector<8x2x50xf32> to vector<8x2xf32>
    %212 = vector.shape_cast %211 : vector<8x2xf32> to vector<8x2x1xf32>
    %213 = vector.shape_cast %207 : vector<1x1xf32> to vector<1x1x1xf32>
    %214 = vector.broadcast %213 : vector<1x1x1xf32> to vector<8x2x1xf32>
    %215 = arith.addf %212, %214 : vector<8x2x1xf32>
    %c0_64 = arith.constant 0 : index
    %c0_65 = arith.constant 0 : index
    %c0_66 = arith.constant 0 : index
    %216 = vector.load %arg7[%c0_64, %c0_65, %c0_66] : memref<8x2x1xf32, #tpu.memory_space<vmem>>, vector<8x2x1xf32>
    tpu.vector_store %arg7[%c0_64, %c0_65, %c0_66], %215 {strides = array<i32>} : memref<8x2x1xf32, #tpu.memory_space<vmem>>, vector<8x2x1xf32>,
    return
  }
  func.func @transform_0(%arg0: i32) -> (i32, i32, i32) {
    %c0_i32 = arith.constant 0 : i32
    %c0_i32_0 = arith.constant 0 : i32
    %c0_i32_1 = arith.constant 0 : i32
    %c0_i32_2 = arith.constant 0 : i32
    return %c0_i32, %c0_i32_0, %c0_i32_1 : i32, i32, i32
  }
  func.func @transform_1(%arg0: i32) -> (i32, i32) {
    %c0_i32 = arith.constant 0 : i32
    %c0_i32_0 = arith.constant 0 : i32
    %c0_i32_1 = arith.constant 0 : i32
    return %c0_i32, %c0_i32_0 : i32, i32
  }
  func.func @transform_2(%arg0: i32) -> (i32, i32) {
    %c0_i32 = arith.constant 0 : i32
    %c0_i32_0 = arith.constant 0 : i32
    %c0_i32_1 = arith.constant 0 : i32
    return %c0_i32, %c0_i32_0 : i32, i32
  }
  func.func @transform_3(%arg0: i32) -> (i32, i32) {
    %c0_i32 = arith.constant 0 : i32
    %c0_i32_0 = arith.constant 0 : i32
    %c0_i32_1 = arith.constant 0 : i32
    return %c0_i32, %c0_i32_0 : i32, i32
  }
  func.func @transform_4(%arg0: i32) -> (i32, i32) {
    %c0_i32 = arith.constant 0 : i32
    %c0_i32_0 = arith.constant 0 : i32
    %c0_i32_1 = arith.constant 0 : i32
    return %c0_i32, %c0_i32_0 : i32, i32
  }
  func.func @transform_5(%arg0: i32) -> (i32, i32) {
    %c0_i32 = arith.constant 0 : i32
    %c0_i32_0 = arith.constant 0 : i32
    %c0_i32_1 = arith.constant 0 : i32
    return %c0_i32, %c0_i32_0 : i32, i32
  }
  func.func @transform_6(%arg0: i32) -> (i32, i32, i32) {
    %c0_i32 = arith.constant 0 : i32
    %c0_i32_0 = arith.constant 0 : i32
    %c0_i32_1 = arith.constant 0 : i32
    %c0_i32_2 = arith.constant 0 : i32
    return %c0_i32, %c0_i32_0, %c0_i32_1 : i32, i32, i32
  }
  func.func @transform_7(%arg0: i32) -> (i32, i32) {
    %c0_i32 = arith.constant 0 : i32
    %c0_i32_0 = arith.constant 0 : i32
    %c0_i32_1 = arith.constant 0 : i32
    return %c0_i32, %c0_i32_0 : i32, i32
  }
  func.func @transform_8(%arg0: i32) -> (i32, i32) {
    %c0_i32 = arith.constant 0 : i32
    %c0_i32_0 = arith.constant 0 : i32
    %c0_i32_1 = arith.constant 0 : i32
    return %c0_i32, %c0_i32_0 : i32, i32
  }
}

</mosaic_0001>

<bundles_post_ra>
// kernel: tpu_custom_call.1
= control target key start
LH: loop header
LB: loop body
LE: loop exit
PB: predicated region body
PF: predicated region fallthrough
CT: control target
= control target key end

     0   :  { %s1788_s0 = inlined_call_operand.hbm [shape: f32[8,2,200], index: 0, kind: input, shape index: {}]   ;;  %s1789_s1 = inlined_call_operand.hbm [shape: f32[50,200], index: 1, kind: input, shape index: {}]   ;;  %s1790_s2 = inlined_call_operand.hbm [shape: f32[1,50], index: 2, kind: input, shape index: {}]   ;;  %s1791_s3 = inlined_call_operand.<no memory space> [shape: f32[1,1], index: 3, kind: input, shape index: {}]   ;;  %s1792_s4 = inlined_call_operand.vmem [shape: f32[2,50], index: 4, kind: input, shape index: {}]   ;;  %s1793_s5 = inlined_call_operand.vmem [shape: f32[2,50], index: 5, kind: input, shape index: {}]   ;;  %s1794_s6 = inlined_call_operand.vmem [shape: f32[8,2,1], index: 6, kind: output, shape index: {0}]   ;;  %s1795_s7 = inlined_call_operand.hbm [shape: f32[2,50], index: 7, kind: output, shape index: {1}]   ;;  %s1796_s8 = inlined_call_operand.hbm [shape: f32[2,50], index: 8, kind: output, shape index: {2}]  }
   0x1   :  { %v14_v0 = vstv %s1791_s3 }
   0x2   :  { %15 = vst [vmem:[#allocation3] sm:$0x1] %v14_v0 }
   0x3   :  { %16 = vsyncpa [#allocation5], 0 }
   0x4   :  { %17 = vsyncpa [#allocation8], 0 }
   0x5   :  { %18 = vsyncpa [#allocation6], 0  ;;  %s37_s9 = sshll.u32 %s1789_s1, 4  ;;  %s38_s9 = int_to_ptr.hbm [resolvable:$true] %s37_s9 }
   0x6   :  { %19 = vsyncpa [#allocation12], 0  ;;  %s1343_s10 = smov [#allocation7]   ;;  %s24_s14 = sshll.u32 %s1788_s0, 4  ;;  %s25_s14 = int_to_ptr.hbm [resolvable:$true] %s24_s14 }
   0x7   :  { %s39_s11 = sshll.u32 %s1343_s10, 4  ;;  %s1344_s15 = smov 256   ;;  %s40_s11 = int_to_ptr.vmem [resolvable:$true] %s39_s11 }
   0x8   :  { %s1345_s16 = smov 16   ;;  %s1346_s3 = smov [#allocation4]  }
   0x9   :  { %45 = dma.hbm_to_vmem [thread:$0]  %s38_s9, 1792, %s40_s11, [#allocation8], %s1344_s15, %s1344_s15, %s1345_s16  }
   0xa   :  { %s26_s17 = sshll.u32 %s1346_s3, 4  ;;  %s1347_s18 = smov 64   ;;  %s27_s17 = int_to_ptr.vmem [resolvable:$true] %s26_s17 }
   0xb   :  { %s1348_s19 = smov 4   ;;  %s51_s21 = sshll.u32 %s1790_s2, 4  ;;  %s52_s21 = int_to_ptr.hbm [resolvable:$true] %s51_s21 }
   0xc   :  { %32 = dma.hbm_to_vmem [thread:$0]  %s25_s14, 512, %s27_s17, [#allocation5], %s1347_s18, %s1347_s18, %s1348_s19  }
   0xd   :  { %s1349_s22 = smov [#allocation9]  }
   0xe   :  { %s53_s23 = sshll.u32 %s1349_s22, 4  ;;  %s54_s23 = int_to_ptr.vmem [resolvable:$true] %s53_s23 }
   0xf   :  { %56 = dma.hbm_to_vmem [thread:$0]  %s52_s21, 16, %s54_s23, [#allocation8]  }
  0x10   :  { %1335 = dma.done.wait [#allocation5], 512  }
  0x11   :  { %1336 = vsyncadd [#allocation5], 4294966784 }
  0x12   :  { %1337 = dma.done.wait [#allocation8], 1808  }
  0x13   :  { %1338 = vsyncadd [#allocation8], 4294965488  ;;  %vm96_vm0 = vcmask 1041408   ;;  %v1413_v1 = vld [vmem:[#allocation7 + $0x68] sm:$0x3]  ;;  %v1417_v3 = vld [vmem:[#allocation7 + $0x58] sm:$0xff] }
  0x14   :  { %v1415_v2 = vld [vmem:[#allocation7 + $0x60] sm:$0x3]  ;;  %1098 = vmatpush.msk.msra.mxu1 %vm96_vm0, %v1413_v1  ;;  %v1423_v4 = vld [vmem:[#allocation7 + $0x50] sm:$0xff]  ;;  %v1425_v5 = vld [vmem:[#allocation7 + $0x48] sm:$0xff]  ;;  %1103 = vmatpush.msk.msra.mxu3 %vm96_vm0, %v1413_v1  ;;  %vm92_vm1 = vcmask 408576   ;;  %s1351_s26 = smov 50  }
  0x15   :  { %1096 = vmatpush.msk.msra.mxu0 %vm96_vm0, %v1415_v2  ;;  %v1427_v6 = vld [vmem:[#allocation7 + $0x40] sm:$0xff]  ;;  %1101 = vmatpush.msk.msra.mxu2 %vm96_vm0, %v1415_v2  ;;  %v1435_v7 = vld [vmem:[#allocation7 + $0x38] sm:$0xff]  ;;  %v1437_v8 = vld [vmem:[#allocation7 + $0x30] sm:$0xff]  ;;  %vm201_vm6 = vcmask 228352   ;;  %s1353_s27 = smov 78   ;;  %s1354_s14 = smov [#allocation11]  }
  0x16   :  { %133 = vmatpush.msra.mxu1 %v1417_v3  ;;  %248 = vmatpush.msra.mxu3 %v1417_v3  ;;  %v1443_v9 = vld [vmem:[#allocation7 + $0x28] sm:$0xff]  ;;  %v1445_v10 = vld [vmem:[#allocation7 + $0x20] sm:$0xff]  ;;  %v1451_v11 = vld [vmem:[#allocation7 + $0x18] sm:$0xff]  ;;  %s1076_s15 = sshll.u32 %s1354_s14, 4  ;;  %s1078_s17 = sshll.u32 %s1796_s8, 4  ;;  %s1077_s15 = int_to_ptr.vmem [resolvable:$true] %s1076_s15  ;;  %s1079_s17 = int_to_ptr.hbm [resolvable:$true] %s1078_s17 }
  0x17   :  { %113 = vmatpush.msra.mxu0 %v1423_v4  ;;  %228 = vmatpush.msra.mxu2 %v1423_v4  ;;  %v1453_v12 = vld [vmem:[#allocation7 + $0x10] sm:$0xff]  ;;  %v1459_v13 = vld [vmem:[#allocation7 + $0x8] sm:$0xff]  ;;  %v1461_v14 = vld [vmem:[#allocation7] sm:$0xff]  ;;  %s1355_s22 = smov [#allocation10]  }
  0x18   :  { %134 = vmatpush.msra.mxu1 %v1425_v5  ;;  %249 = vmatpush.msra.mxu3 %v1425_v5  ;;  %v89_v15 = vld [vmem:[%s1792_s4] sm:$0x3]  ;;  %v91_v19 = vld [vmem:[#allocation4] sm:$0xf]  ;;  %s1350_s4 = smov 106   ;;  %s1065_s23 = sshll.u32 %s1355_s22, 4  ;;  %s1066_s23 = int_to_ptr.vmem [resolvable:$true] %s1065_s23 }
  0x19   :  { %114 = vmatpush.msra.mxu0 %v1427_v6  ;;  %229 = vmatpush.msra.mxu2 %v1427_v6  ;;  %v90_v22 = vld [vmem:[%s1793_s5] sm:$0x3]  ;;  %s1352_s5 = smov 28  }
  0x1a   :  { %135 = vmatpush.msra.mxu1 %v1435_v7  ;;  %250 = vmatpush.msra.mxu3 %v1435_v7  ;;  %v207_v58 = vld [vmem:[#allocation4 + $0x4] sm:$0xf] }
  0x1b   :  { %115 = vmatpush.msra.mxu0 %v1437_v8  ;;  %230 = vmatpush.msra.mxu2 %v1437_v8 }
  0x1c   :  { %136 = vmatpush.msra.mxu1 %v1443_v9  ;;  %251 = vmatpush.msra.mxu3 %v1443_v9 }
  0x1d   :  { %116 = vmatpush.msra.mxu0 %v1445_v10  ;;  %231 = vmatpush.msra.mxu2 %v1445_v10 }
  0x1e   :  { %137 = vmatpush.msra.mxu1 %v1451_v11  ;;  %252 = vmatpush.msra.mxu3 %v1451_v11 }
  0x1f   :  { %117 = vmatpush.msra.mxu0 %v1453_v12  ;;  %232 = vmatpush.msra.mxu2 %v1453_v12 }
  0x20   :  { %138 = vmatpush.msra.mxu1 %v1459_v13  ;;  %253 = vmatpush.msra.mxu3 %v1459_v13 }
  0x21   :  { %118 = vmatpush.msra.mxu0 %v1461_v14  ;;  %1099 = vmatmul.msk.f32.vlgmr.msra.gmra.mxu1 %vm92_vm1, %v89_v15 }
  0x22   :  { %1097 = vmatmul.msk.f32.vlgmr.msra.gmra.mxu0 %vm92_vm1, %v89_v15  ;;  %233 = vmatpush.msra.mxu2 %v1461_v14 }
  0x23   :  { %1106 = vmatpush.msk.msrb.mxu0 %vm96_vm0, %v1415_v2  ;;  %1108 = vmatpush.msk.msrb.mxu1 %vm96_vm0, %v1413_v1 }
  0x24   :  { %1111 = vmatpush.msk.msrb.mxu2 %vm96_vm0, %v1415_v2  ;;  %1113 = vmatpush.msk.msrb.mxu3 %vm96_vm0, %v1413_v1 }
  0x25   :  { %338 = vmatpush.msrb.mxu0 %v1423_v4  ;;  %358 = vmatpush.msrb.mxu1 %v1417_v3 }
  0x26   :  { %448 = vmatpush.msrb.mxu2 %v1423_v4  ;;  %468 = vmatpush.msrb.mxu3 %v1417_v3 }
  0x27   :  { %339 = vmatpush.msrb.mxu0 %v1427_v6  ;;  %359 = vmatpush.msrb.mxu1 %v1425_v5 }
  0x28   :  { %449 = vmatpush.msrb.mxu2 %v1427_v6  ;;  %469 = vmatpush.msrb.mxu3 %v1425_v5 }
  0x29   :  { %340 = vmatpush.msrb.mxu0 %v1437_v8  ;;  %360 = vmatpush.msrb.mxu1 %v1435_v7 }
  0x2a   :  { %450 = vmatpush.msrb.mxu2 %v1437_v8  ;;  %470 = vmatpush.msrb.mxu3 %v1435_v7 }
  0x2b   :  { %341 = vmatpush.msrb.mxu0 %v1445_v10  ;;  %361 = vmatpush.msrb.mxu1 %v1443_v9 }
  0x2c   :  { %451 = vmatpush.msrb.mxu2 %v1445_v10  ;;  %471 = vmatpush.msrb.mxu3 %v1443_v9 }
  0x2d   :  { %342 = vmatpush.msrb.mxu0 %v1453_v12  ;;  %362 = vmatpush.msrb.mxu1 %v1451_v11 }
  0x2e   :  { %452 = vmatpush.msrb.mxu2 %v1453_v12  ;;  %472 = vmatpush.msrb.mxu3 %v1451_v11 }
  0x2f   :  { %343 = vmatpush.msrb.mxu0 %v1461_v14  ;;  %363 = vmatpush.msrb.mxu1 %v1459_v13 }
  0x30   :  { %453 = vmatpush.msrb.mxu2 %v1461_v14  ;;  %473 = vmatpush.msrb.mxu3 %v1459_v13 }
  0x31   :  { %1116 = vmatpush.msk.msra.mxu0 %vm96_vm0, %v1415_v2  ;;  %1118 = vmatpush.msk.msra.mxu1 %vm96_vm0, %v1413_v1 }
  0x33   :  { %558 = vmatpush.msra.mxu0 %v1423_v4  ;;  %578 = vmatpush.msra.mxu1 %v1417_v3 }
  0x35   :  { %559 = vmatpush.msra.mxu0 %v1427_v6  ;;  %579 = vmatpush.msra.mxu1 %v1425_v5 }
  0x37   :  { %560 = vmatpush.msra.mxu0 %v1437_v8  ;;  %580 = vmatpush.msra.mxu1 %v1435_v7 }
  0x39   :  { %561 = vmatpush.msra.mxu0 %v1445_v10  ;;  %581 = vmatpush.msra.mxu1 %v1443_v9 }
  0x3b   :  { %562 = vmatpush.msra.mxu0 %v1453_v12  ;;  %582 = vmatpush.msra.mxu1 %v1451_v11 }
  0x3d   :  { %563 = vmatpush.msra.mxu0 %v1461_v14  ;;  %583 = vmatpush.msra.mxu1 %v1459_v13 }
  0x9e   :  { %v140_v16 = vpop.f32.mrf.mxu1 }
  0x9f   :  { %v120_v17 = vpop.f32.mrf.mxu0  ;;  %v145_v18 = vrot.slane %v140_v16, 6 }
  0xa1   :  { %v146_v20 = vsel %vm96_vm0, %v120_v17, %v145_v18 }
  0xa2   :  { %v148_v21 = vadd.f32 %v146_v20, %v91_v19 }
  0xa4   :  { %169 = vrot.lane.b32.xlu0 %v148_v21, %s1350_s4  ;;  %v1100_v23 = vmul.f32 -1.442695, %v148_v21 }
  0xa6   :  { %1151 = vpow2.f32 %v1100_v23 }
  0xac   :  { %175 = vrot.lane.b32.xlu0 %v90_v22, %s1351_s26  ;;  %v1152_v24 = vpop.eup %1151 }
  0xad   :  { %v152_v25 = vadd.f32 1.0, %v1152_v24 }
  0xaf   :  { %1153 = vrcp.f32 %v152_v25  ;;  %v164_v33 = vand.u32 2147483648, %v152_v25  ;;  %vm158_vm3 = vweird.f32 %v152_v25  ;;  %v162_v34 = vand.u32 2147483647, %v152_v25 }
  0xb1   :  { %v165_v36 = vor.u32 1.1754944e-38, %v164_v33  ;;  %vm163_vm5 = vcmp.eq.f32.partialorder %v162_v34, 8.507059e+37 }
  0xb5   :  { %v1154_v26 = vpop.eup %1153 }
  0xb6   :  { %v154_v27 = vmul.f32 %v1154_v26, %v152_v25  ;;  %vm159_vm2 = vweird.f32 %v1154_v26 }
  0xb7   :  { %vm160_vm4 = vmor %vm158_vm3, %vm159_vm2 }
  0xb8   :  { %v155_v28 = vsub.f32 1.0, %v154_v27 }
  0xba   :  { %v156_v29 = vmul.f32 %v1154_v26, %v155_v28 }
  0xbc   :  { %v157_v32 = vadd.f32 %v1154_v26, %v156_v29 }
  0xbe   :  { %v161_v35 = vsel %vm160_vm4, %v1154_v26, %v157_v32 }
  0xbf   :  { %v166_v38 = vsel %vm163_vm5, %v165_v36, %v161_v35 }
 0x116   :  { %v170_v30 = vpop.permute.xlu0 %169 }
 0x117   :  { %v171_v31 = vrot.slane %v170_v30, 2 }
 0x119   :  { %1155 = vtanh.f32 %v171_v31 }
 0x11e   :  { %v176_v40 = vpop.permute.xlu0 %175 }
 0x11f   :  { %v1156_v37 = vpop.eup %1155  ;;  %v178_v41 = vmul.f32 %v176_v40, %v166_v38 }
 0x120   :  { %v179_v39 = vmul.f32 %v1156_v37, %v166_v38 }
 0x122   :  { %181 = vrot.lane.b32.xlu1 %v179_v39, %s1351_s26 }
 0x194   :  { %v182_v42 = vpop.permute.xlu1 %181 }
 0x195   :  { %v1533_v43 = vadd.f32 %v182_v42, %v178_v41 }
 0x197   :  { %1157 = vtanh.f32 %v1533_v43 }
 0x19d   :  { %v1158_v44 = vpop.eup %1157 }
 0x19e   :  { %187 = vrot.lane.b32.xlu1 %v1158_v44, %s1351_s26 }
 0x210   :  { %v188_v45 = vpop.permute.xlu1 %187 }
 0x211   :  { %v189_v46 = vrot.slane %v188_v45, 6 }
 0x213   :  { %v190_v47 = vsel %vm92_vm1, %v189_v46, %v188_v45  ;;  %v317_v46 = vld [vmem:[#allocation4 + $0x8] sm:$0xf] }
 0x214   :  { %v192_v48 = vmul.f32 %v190_v47, %v166_v38 }
 0x216   :  { %194 = vst [vmem:[#allocation1] ss:$4 sm:$0xff] %v192_v48 }
 0x21d   :  { %v1538_v49 = vld.sshfl [vmem:[#allocation1] sm:$0xff pattern:$0x73625140]  ;;  %v1540_v50 = vld.sshfl [vmem:[#allocation1 + $0x8] sm:$0xff pattern:$0x73625140] }
 0x21e   :  { %208 = vst [vmem:[#allocation1] ss:$4 sm:$0xff] %v192_v48 }
 0x225   :  { %v209_v51 = vld.sshfl [vmem:[#allocation1] sm:$0xff pattern:$0x73625140]  ;;  %v210_v52 = vld.sshfl [vmem:[#allocation1 + $0x8] sm:$0xff pattern:$0x73625140] }
 0x226   :  { %211 = vrot.lane.b32.xlu2 %v209_v51, %s1352_s5 }
 0x22e   :  { %213 = vrot.lane.b32.xlu2 %v210_v52, %s1352_s5 }
 0x280   :  { %v212_v53 = vpop.permute.xlu2 %211 }
 0x288   :  { %v214_v54 = vpop.permute.xlu2 %213 }
 0x289   :  { %v215_v55 = vsel %vm201_vm6, %v212_v53, %v214_v54 }
 0x28a   :  { %1102 = vmatmul.msk.f32.vlgmr.msra.gmra.mxu2 %vm92_vm1, %v215_v55  ;;  %1104 = vmatmul.msk.f32.vlgmr.msra.gmra.mxu3 %vm92_vm1, %v215_v55 }
 0x28b   :  { %1121 = vmatpush.msk.msra.mxu2 %vm96_vm0, %v1415_v2  ;;  %1123 = vmatpush.msk.msra.mxu3 %vm96_vm0, %v1413_v1 }
 0x28d   :  { %668 = vmatpush.msra.mxu2 %v1423_v4  ;;  %688 = vmatpush.msra.mxu3 %v1417_v3 }
 0x28f   :  { %669 = vmatpush.msra.mxu2 %v1427_v6  ;;  %689 = vmatpush.msra.mxu3 %v1425_v5 }
 0x291   :  { %670 = vmatpush.msra.mxu2 %v1437_v8  ;;  %690 = vmatpush.msra.mxu3 %v1435_v7 }
 0x293   :  { %671 = vmatpush.msra.mxu2 %v1445_v10  ;;  %691 = vmatpush.msra.mxu3 %v1443_v9 }
 0x295   :  { %672 = vmatpush.msra.mxu2 %v1453_v12  ;;  %692 = vmatpush.msra.mxu3 %v1451_v11 }
 0x297   :  { %673 = vmatpush.msra.mxu2 %v1461_v14  ;;  %693 = vmatpush.msra.mxu3 %v1459_v13 }
 0x30d   :  { %v255_v56 = vpop.f32.mrf.mxu3  ;;  %v235_v59 = vpop.f32.mrf.mxu2 }
 0x30e   :  { %v260_v57 = vrot.slane %v255_v56, 6 }
 0x310   :  { %v261_v60 = vsel %vm96_vm0, %v235_v59, %v260_v57 }
 0x311   :  { %v263_v61 = vadd.f32 %v261_v60, %v207_v58 }
 0x313   :  { %284 = vrot.lane.b32.xlu0 %v263_v61, %s1350_s4  ;;  %v1105_v62 = vmul.f32 -1.442695, %v263_v61 }
 0x315   :  { %1159 = vpow2.f32 %v1105_v62 }
 0x31b   :  { %v1160_v63 = vpop.eup %1159 }
 0x31c   :  { %v267_v0 = vadd.f32 1.0, %v1160_v63 }
 0x31e   :  { %1161 = vrcp.f32 %v267_v0  ;;  %v279_v22 = vand.u32 2147483648, %v267_v0  ;;  %vm273_vm8 = vweird.f32 %v267_v0  ;;  %v277_v23 = vand.u32 2147483647, %v267_v0 }
 0x320   :  { %v280_v25 = vor.u32 1.1754944e-38, %v279_v22  ;;  %vm278_vm10 = vcmp.eq.f32.partialorder %v277_v23, 8.507059e+37 }
 0x324   :  { %v1162_v15 = vpop.eup %1161 }
 0x325   :  { %v269_v16 = vmul.f32 %v1162_v15, %v267_v0  ;;  %vm274_vm7 = vweird.f32 %v1162_v15 }
 0x326   :  { %vm275_vm9 = vmor %vm273_vm8, %vm274_vm7 }
 0x327   :  { %v270_v17 = vsub.f32 1.0, %v269_v16 }
 0x329   :  { %v271_v18 = vmul.f32 %v1162_v15, %v270_v17 }
 0x32b   :  { %v272_v21 = vadd.f32 %v1162_v15, %v271_v18 }
 0x32d   :  { %v276_v24 = vsel %vm275_vm9, %v1162_v15, %v272_v21 }
 0x32e   :  { %v281_v27 = vsel %vm278_vm10, %v280_v25, %v276_v24 }
 0x32f   :  { %v289_v29 = vmul.f32 %v281_v27, %v1533_v43 }
 0x385   :  { %v285_v19 = vpop.permute.xlu0 %284 }
 0x386   :  { %v286_v20 = vrot.slane %v285_v19, 2 }
 0x388   :  { %1163 = vtanh.f32 %v286_v20 }
 0x38e   :  { %v1164_v26 = vpop.eup %1163 }
 0x38f   :  { %v290_v28 = vmul.f32 %v1164_v26, %v281_v27 }
 0x391   :  { %292 = vrot.lane.b32.xlu1 %v290_v28, %s1351_s26 }
 0x403   :  { %v293_v30 = vpop.permute.xlu1 %292 }
 0x404   :  { %v1567_v31 = vadd.f32 %v293_v30, %v289_v29 }
 0x406   :  { %1165 = vtanh.f32 %v1567_v31 }
 0x40c   :  { %v1166_v32 = vpop.eup %1165 }
 0x40d   :  { %298 = vrot.lane.b32.xlu2 %v1166_v32, %s1351_s26 }
 0x467   :  { %v299_v33 = vpop.permute.xlu2 %298 }
 0x468   :  { %v300_v34 = vrot.slane %v299_v33, 6 }
 0x46a   :  { %v301_v35 = vsel %vm92_vm1, %v300_v34, %v299_v33 }
 0x46b   :  { %v303_v36 = vmul.f32 %v301_v35, %v281_v27 }
 0x46d   :  { %305 = vst [vmem:[#allocation1] ss:$4 sm:$0xff] %v303_v36 }
 0x474   :  { %v1572_v37 = vld.sshfl [vmem:[#allocation1] sm:$0xff pattern:$0x73625140]  ;;  %v1574_v38 = vld.sshfl [vmem:[#allocation1 + $0x8] sm:$0xff pattern:$0x73625140] }
 0x475   :  { %318 = vst [vmem:[#allocation1] ss:$4 sm:$0xff] %v303_v36 }
 0x47c   :  { %v320_v39 = vld.sshfl [vmem:[#allocation1 + $0x8] sm:$0xff pattern:$0x73625140]  ;;  %v319_v40 = vld.sshfl [vmem:[#allocation1] sm:$0xff pattern:$0x73625140] }
 0x47d   :  { %323 = vrot.lane.b32.xlu1 %v320_v39, %s1352_s5  ;;  %321 = vrot.lane.b32.xlu0 %v319_v40, %s1352_s5 }
 0x4ef   :  { %v324_v41 = vpop.permute.xlu1 %323  ;;  %v322_v42 = vpop.permute.xlu0 %321 }
 0x4f0   :  { %v325_v43 = vsel %vm201_vm6, %v322_v42, %v324_v41 }
 0x4f1   :  { %1107 = vmatmul.msk.f32.vlgmr.msrb.gmra.mxu0 %vm92_vm1, %v325_v43  ;;  %1109 = vmatmul.msk.f32.vlgmr.msrb.gmra.mxu1 %vm92_vm1, %v325_v43 }
 0x4f2   :  { %1126 = vmatpush.msk.msrb.mxu0 %vm96_vm0, %v1415_v2  ;;  %1128 = vmatpush.msk.msrb.mxu1 %vm96_vm0, %v1413_v1 }
 0x4f4   :  { %778 = vmatpush.msrb.mxu0 %v1423_v4  ;;  %798 = vmatpush.msrb.mxu1 %v1417_v3 }
 0x4f6   :  { %779 = vmatpush.msrb.mxu0 %v1427_v6  ;;  %799 = vmatpush.msrb.mxu1 %v1425_v5 }
 0x4f8   :  { %780 = vmatpush.msrb.mxu0 %v1437_v8  ;;  %800 = vmatpush.msrb.mxu1 %v1435_v7 }
 0x4fa   :  { %781 = vmatpush.msrb.mxu0 %v1445_v10  ;;  %801 = vmatpush.msrb.mxu1 %v1443_v9 }
 0x4fc   :  { %782 = vmatpush.msrb.mxu0 %v1453_v12  ;;  %802 = vmatpush.msrb.mxu1 %v1451_v11 }
 0x4fe   :  { %783 = vmatpush.msrb.mxu0 %v1461_v14  ;;  %803 = vmatpush.msrb.mxu1 %v1459_v13 }
 0x56e   :  { %v365_v44 = vpop.f32.mrf.mxu1  ;;  %v345_v47 = vpop.f32.mrf.mxu0 }
 0x56f   :  { %v370_v45 = vrot.slane %v365_v44, 6 }
 0x571   :  { %v371_v48 = vsel %vm96_vm0, %v345_v47, %v370_v45 }
 0x572   :  { %v373_v51 = vadd.f32 %v371_v48, %v317_v46 }
 0x574   :  { %394 = vrot.lane.b32.xlu2 %v373_v51, %s1350_s4  ;;  %v1110_v52 = vmul.f32 -1.442695, %v373_v51 }
 0x576   :  { %1167 = vpow2.f32 %v1110_v52 }
 0x57c   :  { %v1168_v53 = vpop.eup %1167 }
 0x57d   :  { %v377_v54 = vadd.f32 1.0, %v1168_v53 }
 0x57f   :  { %1169 = vrcp.f32 %v377_v54  ;;  %v389_v62 = vand.u32 2147483648, %v377_v54  ;;  %vm383_vm12 = vweird.f32 %v377_v54  ;;  %v387_v63 = vand.u32 2147483647, %v377_v54 }
 0x581   :  { %v390_v15 = vor.u32 1.1754944e-38, %v389_v62  ;;  %vm388_vm14 = vcmp.eq.f32.partialorder %v387_v63, 8.507059e+37 }
 0x585   :  { %v1170_v55 = vpop.eup %1169 }
 0x586   :  { %v379_v56 = vmul.f32 %v1170_v55, %v377_v54  ;;  %vm384_vm11 = vweird.f32 %v1170_v55 }
 0x587   :  { %vm385_vm13 = vmor %vm383_vm12, %vm384_vm11 }
 0x588   :  { %v380_v57 = vsub.f32 1.0, %v379_v56 }
 0x58a   :  { %v381_v58 = vmul.f32 %v1170_v55, %v380_v57 }
 0x58c   :  { %v382_v61 = vadd.f32 %v1170_v55, %v381_v58 }
 0x58e   :  { %v386_v0 = vsel %vm385_vm13, %v1170_v55, %v382_v61 }
 0x58f   :  { %v391_v17 = vsel %vm388_vm14, %v390_v15, %v386_v0  ;;  %v537_v0 = vld [vmem:[#allocation4 + $0x10] sm:$0xf] }
 0x590   :  { %v399_v19 = vmul.f32 %v391_v17, %v1567_v31 }
 0x5ce   :  { %v395_v59 = vpop.permute.xlu2 %394 }
 0x5cf   :  { %v396_v60 = vrot.slane %v395_v59, 2 }
 0x5d1   :  { %1171 = vtanh.f32 %v396_v60 }
 0x5d7   :  { %v1172_v16 = vpop.eup %1171 }
 0x5d8   :  { %v400_v18 = vmul.f32 %v1172_v16, %v391_v17 }
 0x5da   :  { %402 = vrot.lane.b32.xlu0 %v400_v18, %s1351_s26 }
 0x64c   :  { %v403_v20 = vpop.permute.xlu0 %402 }
 0x64d   :  { %v1601_v21 = vadd.f32 %v403_v20, %v399_v19 }
 0x64f   :  { %1173 = vtanh.f32 %v1601_v21 }
 0x655   :  { %v1174_v22 = vpop.eup %1173 }
 0x656   :  { %408 = vrot.lane.b32.xlu1 %v1174_v22, %s1351_s26 }
 0x6c8   :  { %v409_v23 = vpop.permute.xlu1 %408 }
 0x6c9   :  { %v410_v24 = vrot.slane %v409_v23, 6 }
 0x6cb   :  { %v411_v25 = vsel %vm92_vm1, %v410_v24, %v409_v23 }
 0x6cc   :  { %v413_v26 = vmul.f32 %v411_v25, %v391_v17 }
 0x6ce   :  { %415 = vst [vmem:[#allocation1] ss:$4 sm:$0xff] %v413_v26 }
 0x6d5   :  { %v1606_v27 = vld.sshfl [vmem:[#allocation1] sm:$0xff pattern:$0x73625140]  ;;  %v1608_v28 = vld.sshfl [vmem:[#allocation1 + $0x8] sm:$0xff pattern:$0x73625140] }
 0x6d6   :  { %428 = vst [vmem:[#allocation1] ss:$4 sm:$0xff] %v413_v26 }
 0x6dd   :  { %v430_v29 = vld.sshfl [vmem:[#allocation1 + $0x8] sm:$0xff pattern:$0x73625140]  ;;  %v429_v30 = vld.sshfl [vmem:[#allocation1] sm:$0xff pattern:$0x73625140] }
 0x6de   :  { %433 = vrot.lane.b32.xlu0 %v430_v29, %s1352_s5  ;;  %431 = vrot.lane.b32.xlu2 %v429_v30, %s1352_s5 }
 0x738   :  { %v432_v31 = vpop.permute.xlu2 %431 }
 0x750   :  { %v434_v32 = vpop.permute.xlu0 %433 }
 0x751   :  { %v435_v33 = vsel %vm201_vm6, %v432_v31, %v434_v32 }
 0x752   :  { %1112 = vmatmul.msk.f32.vlgmr.msrb.gmra.mxu2 %vm92_vm1, %v435_v33  ;;  %1114 = vmatmul.msk.f32.vlgmr.msrb.gmra.mxu3 %vm92_vm1, %v435_v33 }
 0x753   :  { %1131 = vmatpush.msk.msrb.mxu2 %vm96_vm0, %v1415_v2  ;;  %1133 = vmatpush.msk.msrb.mxu3 %vm96_vm0, %v1413_v1 }
 0x755   :  { %888 = vmatpush.msrb.mxu2 %v1423_v4  ;;  %908 = vmatpush.msrb.mxu3 %v1417_v3  ;;  %v427_v3 = vld [vmem:[#allocation4 + $0xc] sm:$0xf] }
 0x757   :  { %889 = vmatpush.msrb.mxu2 %v1427_v6  ;;  %909 = vmatpush.msrb.mxu3 %v1425_v5 }
 0x759   :  { %890 = vmatpush.msrb.mxu2 %v1437_v8  ;;  %910 = vmatpush.msrb.mxu3 %v1435_v7 }
 0x75b   :  { %891 = vmatpush.msrb.mxu2 %v1445_v10  ;;  %911 = vmatpush.msrb.mxu3 %v1443_v9 }
 0x75d   :  { %892 = vmatpush.msrb.mxu2 %v1453_v12  ;;  %912 = vmatpush.msrb.mxu3 %v1451_v11 }
 0x75f   :  { %893 = vmatpush.msrb.mxu2 %v1461_v14  ;;  %913 = vmatpush.msrb.mxu3 %v1459_v13 }
 0x7d5   :  { %v475_v1 = vpop.f32.mrf.mxu3  ;;  %v455_v4 = vpop.f32.mrf.mxu2 }
 0x7d6   :  { %v480_v2 = vrot.slane %v475_v1, 6 }
 0x7d8   :  { %v481_v5 = vsel %vm96_vm0, %v455_v4, %v480_v2 }
 0x7d9   :  { %v483_v6 = vadd.f32 %v481_v5, %v427_v3 }
 0x7db   :  { %504 = vrot.lane.b32.xlu1 %v483_v6, %s1350_s4  ;;  %v1115_v7 = vmul.f32 -1.442695, %v483_v6 }
 0x7dd   :  { %1175 = vpow2.f32 %v1115_v7 }
 0x7e3   :  { %v1176_v8 = vpop.eup %1175 }
 0x7e4   :  { %v487_v9 = vadd.f32 1.0, %v1176_v8 }
 0x7e6   :  { %1177 = vrcp.f32 %v487_v9  ;;  %v499_v36 = vand.u32 2147483648, %v487_v9  ;;  %vm493_vm2 = vweird.f32 %v487_v9  ;;  %v497_v39 = vand.u32 2147483647, %v487_v9 }
 0x7e8   :  { %v500_v41 = vor.u32 1.1754944e-38, %v499_v36  ;;  %vm498_vm4 = vcmp.eq.f32.partialorder %v497_v39, 8.507059e+37 }
 0x7ec   :  { %v1178_v10 = vpop.eup %1177 }
 0x7ed   :  { %v489_v11 = vmul.f32 %v1178_v10, %v487_v9  ;;  %vm494_vm15 = vweird.f32 %v1178_v10 }
 0x7ee   :  { %vm495_vm3 = vmor %vm493_vm2, %vm494_vm15 }
 0x7ef   :  { %v490_v12 = vsub.f32 1.0, %v489_v11 }
 0x7f1   :  { %v491_v14 = vmul.f32 %v1178_v10, %v490_v12 }
 0x7f3   :  { %v492_v35 = vadd.f32 %v1178_v10, %v491_v14 }
 0x7f5   :  { %v496_v40 = vsel %vm495_vm3, %v1178_v10, %v492_v35 }
 0x7f6   :  { %v501_v43 = vsel %vm498_vm4, %v500_v41, %v496_v40 }
 0x7f7   :  { %v509_v45 = vmul.f32 %v501_v43, %v1601_v21 }
 0x84d   :  { %v505_v34 = vpop.permute.xlu1 %504 }
 0x84e   :  { %v506_v13 = vrot.slane %v505_v34, 2 }
 0x850   :  { %1179 = vtanh.f32 %v506_v13 }
 0x856   :  { %v1180_v42 = vpop.eup %1179 }
 0x857   :  { %v510_v44 = vmul.f32 %v1180_v42, %v501_v43  ;;  %v647_v42 = vld [vmem:[#allocation4 + $0x14] sm:$0xf] }
 0x859   :  { %512 = vrot.lane.b32.xlu2 %v510_v44, %s1351_s26 }
 0x8b3   :  { %v513_v46 = vpop.permute.xlu2 %512 }
 0x8b4   :  { %v515_v47 = vadd.f32 %v513_v46, %v509_v45 }
 0x8b6   :  { %1181 = vtanh.f32 %v515_v47 }
 0x8bc   :  { %v1182_v48 = vpop.eup %1181 }
 0x8bd   :  { %518 = vrot.lane.b32.xlu0 %v1182_v48, %s1351_s26 }
 0x92f   :  { %v519_v51 = vpop.permute.xlu0 %518 }
 0x930   :  { %v520_v52 = vrot.slane %v519_v51, 6 }
 0x932   :  { %v521_v53 = vsel %vm92_vm1, %v520_v52, %v519_v51 }
 0x933   :  { %v523_v54 = vmul.f32 %v521_v53, %v501_v43 }
 0x935   :  { %525 = vst [vmem:[#allocation1] ss:$4 sm:$0xff] %v523_v54 }
 0x93c   :  { %v1637_v55 = vld.sshfl [vmem:[#allocation1] sm:$0xff pattern:$0x73625140]  ;;  %v1639_v56 = vld.sshfl [vmem:[#allocation1 + $0x8] sm:$0xff pattern:$0x73625140] }
 0x93d   :  { %538 = vst [vmem:[#allocation1] ss:$4 sm:$0xff] %v523_v54 }
 0x944   :  { %v540_v57 = vld.sshfl [vmem:[#allocation1 + $0x8] sm:$0xff pattern:$0x73625140]  ;;  %v539_v58 = vld.sshfl [vmem:[#allocation1] sm:$0xff pattern:$0x73625140] }
 0x945   :  { %543 = vrot.lane.b32.xlu2 %v540_v57, %s1352_s5  ;;  %541 = vrot.lane.b32.xlu1 %v539_v58, %s1352_s5 }
 0x99f   :  { %v544_v59 = vpop.permute.xlu2 %543 }
 0x9b7   :  { %v542_v60 = vpop.permute.xlu1 %541 }
 0x9b8   :  { %v545_v61 = vsel %vm201_vm6, %v542_v60, %v544_v59 }
 0x9b9   :  { %1117 = vmatmul.msk.f32.vlgmr.msra.gmra.mxu0 %vm92_vm1, %v545_v61  ;;  %1119 = vmatmul.msk.f32.vlgmr.msra.gmra.mxu1 %vm92_vm1, %v545_v61 }
 0xa36   :  { %v585_v62 = vpop.f32.mrf.mxu1  ;;  %v565_v15 = vpop.f32.mrf.mxu0 }
 0xa37   :  { %v590_v63 = vrot.slane %v585_v62, 6 }
 0xa39   :  { %v591_v16 = vsel %vm96_vm0, %v565_v15, %v590_v63 }
 0xa3a   :  { %v593_v17 = vadd.f32 %v591_v16, %v537_v0 }
 0xa3c   :  { %614 = vrot.lane.b32.xlu0 %v593_v17, %s1350_s4  ;;  %v1120_v18 = vmul.f32 -1.442695, %v593_v17 }
 0xa3e   :  { %1183 = vpow2.f32 %v1120_v18 }
 0xa44   :  { %v1184_v19 = vpop.eup %1183 }
 0xa45   :  { %v597_v20 = vadd.f32 1.0, %v1184_v19 }
 0xa47   :  { %1185 = vrcp.f32 %v597_v20  ;;  %v609_v30 = vand.u32 2147483648, %v597_v20  ;;  %vm603_vm7 = vweird.f32 %v597_v20  ;;  %v607_v31 = vand.u32 2147483647, %v597_v20 }
 0xa49   :  { %v610_v33 = vor.u32 1.1754944e-38, %v609_v30  ;;  %vm608_vm9 = vcmp.eq.f32.partialorder %v607_v31, 8.507059e+37 }
 0xa4d   :  { %v1186_v21 = vpop.eup %1185 }
 0xa4e   :  { %v599_v22 = vmul.f32 %v1186_v21, %v597_v20  ;;  %vm604_vm5 = vweird.f32 %v1186_v21 }
 0xa4f   :  { %vm605_vm8 = vmor %vm603_vm7, %vm604_vm5 }
 0xa50   :  { %v600_v23 = vsub.f32 1.0, %v599_v22 }
 0xa52   :  { %v601_v24 = vmul.f32 %v1186_v21, %v600_v23 }
 0xa54   :  { %v602_v29 = vadd.f32 %v1186_v21, %v601_v24 }
 0xa56   :  { %v606_v32 = vsel %vm605_vm8, %v1186_v21, %v602_v29  ;;  %vm204_vm8 = vcmask 402432  }
 0xa57   :  { %v611_v2 = vsel %vm608_vm9, %v610_v33, %v606_v32 }
 0xa58   :  { %v619_v4 = vmul.f32 %v611_v2, %v515_v47 }
 0xaae   :  { %v615_v25 = vpop.permute.xlu0 %614 }
 0xaaf   :  { %v616_v26 = vrot.slane %v615_v25, 2 }
 0xab1   :  { %1187 = vtanh.f32 %v616_v26 }
 0xab7   :  { %v1188_v1 = vpop.eup %1187 }
 0xab8   :  { %v620_v3 = vmul.f32 %v1188_v1, %v611_v2 }
 0xaba   :  { %622 = vrot.lane.b32.xlu1 %v620_v3, %s1351_s26  ;;  %v757_v3 = vld [vmem:[#allocation4 + $0x18] sm:$0xf] }
 0xb2c   :  { %v623_v5 = vpop.permute.xlu1 %622 }
 0xb2d   :  { %v625_v6 = vadd.f32 %v623_v5, %v619_v4 }
 0xb2f   :  { %1189 = vtanh.f32 %v625_v6 }
 0xb35   :  { %v1190_v7 = vpop.eup %1189 }
 0xb36   :  { %628 = vrot.lane.b32.xlu2 %v1190_v7, %s1351_s26 }
 0xb90   :  { %v629_v8 = vpop.permute.xlu2 %628 }
 0xb91   :  { %v630_v9 = vrot.slane %v629_v8, 6 }
 0xb93   :  { %v631_v10 = vsel %vm92_vm1, %v630_v9, %v629_v8 }
 0xb94   :  { %v633_v11 = vmul.f32 %v631_v10, %v611_v2 }
 0xb96   :  { %635 = vst [vmem:[#allocation1] ss:$4 sm:$0xff] %v633_v11 }
 0xb9d   :  { %v1651_v12 = vld.sshfl [vmem:[#allocation1] sm:$0xff pattern:$0x73625140]  ;;  %v1653_v14 = vld.sshfl [vmem:[#allocation1 + $0x8] sm:$0xff pattern:$0x73625140] }
 0xb9e   :  { %648 = vst [vmem:[#allocation1] ss:$4 sm:$0xff] %v633_v11 }
 0xba5   :  { %v650_v34 = vld.sshfl [vmem:[#allocation1 + $0x8] sm:$0xff pattern:$0x73625140]  ;;  %v649_v13 = vld.sshfl [vmem:[#allocation1] sm:$0xff pattern:$0x73625140] }
 0xba6   :  { %653 = vrot.lane.b32.xlu1 %v650_v34, %s1352_s5  ;;  %651 = vrot.lane.b32.xlu0 %v649_v13, %s1352_s5 }
 0xc18   :  { %v654_v35 = vpop.permute.xlu1 %653  ;;  %v652_v36 = vpop.permute.xlu0 %651 }
 0xc19   :  { %v655_v39 = vsel %vm201_vm6, %v652_v36, %v654_v35 }
 0xc1a   :  { %1122 = vmatmul.msk.f32.vlgmr.msra.gmra.mxu2 %vm92_vm1, %v655_v39  ;;  %1124 = vmatmul.msk.f32.vlgmr.msra.gmra.mxu3 %vm92_vm1, %v655_v39 }
 0xc9d   :  { %v695_v40 = vpop.f32.mrf.mxu3  ;;  %v675_v43 = vpop.f32.mrf.mxu2 }
 0xc9e   :  { %v700_v41 = vrot.slane %v695_v40, 6 }
 0xca0   :  { %v701_v44 = vsel %vm96_vm0, %v675_v43, %v700_v41 }
 0xca1   :  { %v703_v45 = vadd.f32 %v701_v44, %v647_v42 }
 0xca3   :  { %724 = vrot.lane.b32.xlu2 %v703_v45, %s1350_s4  ;;  %v1125_v46 = vmul.f32 -1.442695, %v703_v45 }
 0xca5   :  { %1191 = vpow2.f32 %v1125_v46 }
 0xcab   :  { %v1192_v47 = vpop.eup %1191 }
 0xcac   :  { %v707_v48 = vadd.f32 1.0, %v1192_v47 }
 0xcae   :  { %1193 = vrcp.f32 %v707_v48  ;;  %v719_v60 = vand.u32 2147483648, %v707_v48  ;;  %vm713_vm11 = vweird.f32 %v707_v48  ;;  %v717_v61 = vand.u32 2147483647, %v707_v48 }
 0xcb0   :  { %v720_v63 = vor.u32 1.1754944e-38, %v719_v60  ;;  %vm718_vm13 = vcmp.eq.f32.partialorder %v717_v61, 8.507059e+37 }
 0xcb4   :  { %v1194_v51 = vpop.eup %1193 }
 0xcb5   :  { %v709_v52 = vmul.f32 %v1194_v51, %v707_v48  ;;  %vm714_vm10 = vweird.f32 %v1194_v51 }
 0xcb6   :  { %vm715_vm12 = vmor %vm713_vm11, %vm714_vm10 }
 0xcb7   :  { %v710_v53 = vsub.f32 1.0, %v709_v52 }
 0xcb9   :  { %v711_v54 = vmul.f32 %v1194_v51, %v710_v53 }
 0xcbb   :  { %v712_v59 = vadd.f32 %v1194_v51, %v711_v54 }
 0xcbd   :  { %v716_v62 = vsel %vm715_vm12, %v1194_v51, %v712_v59 }
 0xcbe   :  { %v721_v15 = vsel %vm718_vm13, %v720_v63, %v716_v62 }
 0xcbf   :  { %v729_v17 = vmul.f32 %v721_v15, %v625_v6 }
 0xcfd   :  { %v725_v57 = vpop.permute.xlu2 %724 }
 0xcfe   :  { %v726_v58 = vrot.slane %v725_v57, 2 }
 0xd00   :  { %1195 = vtanh.f32 %v726_v58 }
 0xd06   :  { %v1196_v0 = vpop.eup %1195 }
 0xd07   :  { %v730_v16 = vmul.f32 %v1196_v0, %v721_v15 }
 0xd09   :  { %732 = vrot.lane.b32.xlu0 %v730_v16, %s1351_s26 }
 0xd7b   :  { %v733_v18 = vpop.permute.xlu0 %732 }
 0xd7c   :  { %v735_v19 = vadd.f32 %v733_v18, %v729_v17  ;;  %v867_v18 = vld [vmem:[#allocation4 + $0x1c] sm:$0xf] }
 0xd7e   :  { %1197 = vtanh.f32 %v735_v19 }
 0xd84   :  { %v1198_v20 = vpop.eup %1197 }
 0xd85   :  { %738 = vrot.lane.b32.xlu1 %v1198_v20, %s1351_s26 }
 0xdf7   :  { %v739_v21 = vpop.permute.xlu1 %738 }
 0xdf8   :  { %v740_v22 = vrot.slane %v739_v21, 6 }
 0xdfa   :  { %v741_v23 = vsel %vm92_vm1, %v740_v22, %v739_v21 }
 0xdfb   :  { %v743_v24 = vmul.f32 %v741_v23, %v721_v15 }
 0xdfd   :  { %745 = vst [vmem:[#allocation1] ss:$4 sm:$0xff] %v743_v24 }
 0xe04   :  { %v1665_v25 = vld.sshfl [vmem:[#allocation1] sm:$0xff pattern:$0x73625140]  ;;  %v1667_v26 = vld.sshfl [vmem:[#allocation1 + $0x8] sm:$0xff pattern:$0x73625140] }
 0xe05   :  { %758 = vst [vmem:[#allocation1] ss:$4 sm:$0xff] %v743_v24 }
 0xe0c   :  { %v760_v29 = vld.sshfl [vmem:[#allocation1 + $0x8] sm:$0xff pattern:$0x73625140]  ;;  %v759_v30 = vld.sshfl [vmem:[#allocation1] sm:$0xff pattern:$0x73625140] }
 0xe0d   :  { %763 = vrot.lane.b32.xlu0 %v760_v29, %s1352_s5  ;;  %761 = vrot.lane.b32.xlu2 %v759_v30, %s1352_s5 }
 0xe67   :  { %v762_v31 = vpop.permute.xlu2 %761 }
 0xe7f   :  { %v764_v32 = vpop.permute.xlu0 %763 }
 0xe80   :  { %v765_v33 = vsel %vm201_vm6, %v762_v31, %v764_v32 }
 0xe81   :  { %1127 = vmatmul.msk.f32.vlgmr.msrb.gmra.mxu0 %vm92_vm1, %v765_v33  ;;  %1129 = vmatmul.msk.f32.vlgmr.msrb.gmra.mxu1 %vm92_vm1, %v765_v33 }
 0xefe   :  { %v805_v1 = vpop.f32.mrf.mxu1  ;;  %v785_v4 = vpop.f32.mrf.mxu0 }
 0xeff   :  { %v810_v2 = vrot.slane %v805_v1, 6 }
 0xf01   :  { %v811_v5 = vsel %vm96_vm0, %v785_v4, %v810_v2 }
 0xf02   :  { %v813_v6 = vadd.f32 %v811_v5, %v757_v3 }
 0xf04   :  { %834 = vrot.lane.b32.xlu1 %v813_v6, %s1350_s4  ;;  %v1130_v7 = vmul.f32 -1.442695, %v813_v6 }
 0xf06   :  { %1199 = vpow2.f32 %v1130_v7 }
 0xf0c   :  { %v1200_v8 = vpop.eup %1199 }
 0xf0d   :  { %v817_v9 = vadd.f32 1.0, %v1200_v8 }
 0xf0f   :  { %1201 = vrcp.f32 %v817_v9  ;;  %v829_v40 = vand.u32 2147483648, %v817_v9  ;;  %vm823_vm15 = vweird.f32 %v817_v9  ;;  %v827_v41 = vand.u32 2147483647, %v817_v9 }
 0xf11   :  { %v830_v43 = vor.u32 1.1754944e-38, %v829_v40  ;;  %vm828_vm3 = vcmp.eq.f32.partialorder %v827_v41, 8.507059e+37 }
 0xf15   :  { %v1202_v10 = vpop.eup %1201 }
 0xf16   :  { %v819_v11 = vmul.f32 %v1202_v10, %v817_v9  ;;  %vm824_vm14 = vweird.f32 %v1202_v10 }
 0xf17   :  { %vm825_vm2 = vmor %vm823_vm15, %vm824_vm14 }
 0xf18   :  { %v820_v34 = vsub.f32 1.0, %v819_v11 }
 0xf1a   :  { %v821_v13 = vmul.f32 %v1202_v10, %v820_v34 }
 0xf1c   :  { %v822_v39 = vadd.f32 %v1202_v10, %v821_v13 }
 0xf1e   :  { %v826_v42 = vsel %vm825_vm2, %v1202_v10, %v822_v39 }
 0xf1f   :  { %v831_v45 = vsel %vm828_vm3, %v830_v43, %v826_v42 }
 0xf20   :  { %v839_v47 = vmul.f32 %v831_v45, %v735_v19 }
 0xf76   :  { %v835_v35 = vpop.permute.xlu1 %834 }
 0xf77   :  { %v836_v36 = vrot.slane %v835_v35, 2 }
 0xf79   :  { %1203 = vtanh.f32 %v836_v36 }
 0xf7f   :  { %v1204_v44 = vpop.eup %1203 }
 0xf80   :  { %v840_v46 = vmul.f32 %v1204_v44, %v831_v45 }
 0xf82   :  { %842 = vrot.lane.b32.xlu2 %v840_v46, %s1351_s26 }
 0xfdc   :  { %v843_v48 = vpop.permute.xlu2 %842 }
 0xfdd   :  { %v1677_v51 = vadd.f32 %v843_v48, %v839_v47  ;;  %v1149_v48 = vld [vmem:[#allocation9] ss:$0 sm:$0xff] }
 0xfdf   :  { %1205 = vtanh.f32 %v1677_v51 }
 0xfe5   :  { %v1206_v52 = vpop.eup %1205 }
 0xfe6   :  { %848 = vrot.lane.b32.xlu0 %v1206_v52, %s1351_s26 }
0x1058   :  { %v849_v53 = vpop.permute.xlu0 %848 }
0x1059   :  { %v850_v54 = vrot.slane %v849_v53, 6 }
0x105b   :  { %v851_v57 = vsel %vm92_vm1, %v850_v54, %v849_v53 }
0x105c   :  { %v853_v58 = vmul.f32 %v851_v57, %v831_v45 }
0x105e   :  { %855 = vst [vmem:[#allocation1] ss:$4 sm:$0xff] %v853_v58 }
0x1065   :  { %v856_v59 = vld.sshfl [vmem:[#allocation1] sm:$0xff pattern:$0x73625140]  ;;  %v857_v60 = vld.sshfl [vmem:[#allocation1 + $0x8] sm:$0xff pattern:$0x73625140] }
0x1066   :  { %868 = vst [vmem:[#allocation1] ss:$4 sm:$0xff] %v853_v58 }
0x106d   :  { %v870_v61 = vld.sshfl [vmem:[#allocation1 + $0x8] sm:$0xff pattern:$0x73625140]  ;;  %v869_v62 = vld.sshfl [vmem:[#allocation1] sm:$0xff pattern:$0x73625140] }
0x106e   :  { %873 = vrot.lane.b32.xlu2 %v870_v61, %s1352_s5  ;;  %871 = vrot.lane.b32.xlu1 %v869_v62, %s1352_s5 }
0x10c8   :  { %v874_v63 = vpop.permute.xlu2 %873 }
0x10e0   :  { %v872_v0 = vpop.permute.xlu1 %871 }
0x10e1   :  { %v875_v15 = vsel %vm201_vm6, %v872_v0, %v874_v63 }
0x10e2   :  { %1132 = vmatmul.msk.f32.vlgmr.msrb.gmra.mxu2 %vm92_vm1, %v875_v15  ;;  %1134 = vmatmul.msk.f32.vlgmr.msrb.gmra.mxu3 %vm92_vm1, %v875_v15 }
0x1165   :  { %v915_v16 = vpop.f32.mrf.mxu3  ;;  %v895_v19 = vpop.f32.mrf.mxu2 }
0x1166   :  { %v920_v17 = vrot.slane %v915_v16, 6 }
0x1168   :  { %v921_v20 = vsel %vm96_vm0, %v895_v19, %v920_v17 }
0x1169   :  { %v923_v21 = vadd.f32 %v921_v20, %v867_v18 }
0x116b   :  { %944 = vrot.lane.b32.xlu0 %v923_v21, %s1350_s4  ;;  %v1135_v22 = vmul.f32 -1.442695, %v923_v21  ;;  %s1067_s4 = sshll.u32 %s1795_s7, 4  ;;  %s1068_s4 = int_to_ptr.hbm [resolvable:$true] %s1067_s4 }
0x116d   :  { %1207 = vpow2.f32 %v1135_v22 }
0x1173   :  { %197 = vrot.lane.b32.xlu0 %v1538_v49, %s1352_s5  ;;  %v1208_v23 = vpop.eup %1207 }
0x1174   :  { %v927_v24 = vadd.f32 1.0, %v1208_v23 }
0x1176   :  { %1209 = vrcp.f32 %v927_v24  ;;  %vm933_vm4 = vweird.f32 %v927_v24  ;;  %v937_v1 = vand.u32 2147483647, %v927_v24 }
0x1178   :  { %vm938_vm7 = vcmp.eq.f32.partialorder %v937_v1, 8.507059e+37 }
0x117b   :  { %310 = vrot.lane.b32.xlu0 %v1574_v38, %s1352_s5 }
0x117c   :  { %v1210_v29 = vpop.eup %1209 }
0x117d   :  { %v929_v30 = vmul.f32 %v1210_v29, %v927_v24  ;;  %vm934_vm0 = vweird.f32 %v1210_v29 }
0x117e   :  { %vm935_vm5 = vmor %vm933_vm4, %vm934_vm0 }
0x117f   :  { %v930_v31 = vsub.f32 1.0, %v929_v30 }
0x1181   :  { %v931_v49 = vmul.f32 %v1210_v29, %v930_v31 }
0x1183   :  { %528 = vrot.lane.b32.xlu0 %v1637_v55, %s1352_s5  ;;  %v932_v38 = vadd.f32 %v1210_v29, %v931_v49  ;;  %v939_v55 = vand.u32 2147483648, %v927_v24 }
0x1185   :  { %v940_v2 = vor.u32 1.1754944e-38, %v939_v55 }
0x118b   :  { %640 = vrot.lane.b32.xlu0 %v1653_v14, %s1352_s5  ;;  %v936_v14 = vsel %vm935_vm5, %v1210_v29, %v932_v38  ;;  %v1150_v38 = vld [vmem:[#allocation3] ss:$0 sm:$0xff] }
0x118c   :  { %v941_v4 = vsel %vm938_vm7, %v940_v2, %v936_v14 }
0x118d   :  { %v949_v6 = vmul.f32 %v941_v4, %v1677_v51 }
0x1193   :  { %858 = vrot.lane.b32.xlu0 %v856_v59, %s1352_s5 }
0x11dd   :  { %v945_v32 = vpop.permute.xlu0 %944 }
0x11de   :  { %v946_v33 = vrot.slane %v945_v32, 2 }
0x11e0   :  { %1211 = vtanh.f32 %v946_v33 }
0x11e5   :  { %v198_v7 = vpop.permute.xlu0 %197 }
0x11e6   :  { %v1212_v3 = vpop.eup %1211 }
0x11e7   :  { %v950_v5 = vmul.f32 %v1212_v3, %v941_v4 }
0x11e9   :  { %952 = vrot.lane.b32.xlu1 %v950_v5, %s1351_s26 }
0x11f1   :  { %199 = vrot.lane.b32.xlu1 %v1540_v50, %s1352_s5 }
0x11f9   :  { %418 = vrot.lane.b32.xlu1 %v1606_v27, %s1352_s5  ;;  %v311_v27 = vpop.permute.xlu0 %310 }
0x1201   :  { %530 = vrot.lane.b32.xlu1 %v1639_v56, %s1352_s5 }
0x1209   :  { %748 = vrot.lane.b32.xlu1 %v1665_v25, %s1352_s5  ;;  %v529_v25 = vpop.permute.xlu0 %528 }
0x1211   :  { %860 = vrot.lane.b32.xlu1 %v857_v60, %s1352_s5  ;;  %v641_v35 = vpop.permute.xlu0 %640 }
0x1219   :  { %v859_v39 = vpop.permute.xlu0 %858 }
0x125b   :  { %v953_v8 = vpop.permute.xlu1 %952 }
0x125c   :  { %v955_v9 = vadd.f32 %v953_v8, %v949_v6 }
0x125e   :  { %1213 = vtanh.f32 %v955_v9 }
0x1263   :  { %v200_v10 = vpop.permute.xlu1 %199 }
0x1264   :  { %v1214_v50 = vpop.eup %1213  ;;  %v202_v11 = vsel %vm201_vm6, %v198_v7, %v200_v10 }
0x1265   :  { %205 = vst.msk [vmem:[#allocation2] sm:$0x3] %vm204_vm8, %v202_v11  ;;  %958 = vrot.lane.b32.xlu2 %v1214_v50, %s1351_s26 }
0x126b   :  { %v419_v56 = vpop.permute.xlu1 %418 }
0x126c   :  { %v993_v18 = vld [vmem:[#allocation2] sm:$0x3] }
0x126d   :  { %308 = vrot.lane.b32.xlu2 %v1572_v37, %s1352_s5  ;;  %v1006_v19 = vmul.f32 %v1149_v48, %v993_v18 }
0x126f   :  { %v1014_v20 = vsel %vm204_vm8, %v1006_v19, 0.0 }
0x1273   :  { %v531_v34 = vpop.permute.xlu1 %530 }
0x1274   :  { %v532_v13 = vsel %vm201_vm6, %v529_v25, %v531_v34 }
0x1275   :  { %535 = vst.msk [vmem:[#allocation2 + $0x6] sm:$0x3] %vm204_vm8, %v532_v13  ;;  %420 = vrot.lane.b32.xlu2 %v1608_v28, %s1352_s5 }
0x127b   :  { %v749_v36 = vpop.permute.xlu1 %748 }
0x127c   :  { %v996_v21 = vld [vmem:[#allocation2 + $0x6] sm:$0x3] }
0x127d   :  { %638 = vrot.lane.b32.xlu2 %v1651_v12, %s1352_s5  ;;  %v1009_v22 = vmul.f32 %v1149_v48, %v996_v21 }
0x127f   :  { %v1023_v23 = vsel %vm204_vm8, %v1009_v22, 0.0 }
0x1283   :  { %v861_v40 = vpop.permute.xlu1 %860 }
0x1284   :  { %v862_v41 = vsel %vm201_vm6, %v859_v39, %v861_v40 }
0x1285   :  { %865 = vst.msk [vmem:[#allocation2 + $0xc] sm:$0x3] %vm204_vm8, %v862_v41  ;;  %750 = vrot.lane.b32.xlu2 %v1667_v26, %s1352_s5 }
0x128c   :  { %v999_v63 = vld [vmem:[#allocation2 + $0xc] sm:$0x3] }
0x128d   :  { %v1012_v15 = vmul.f32 %v1149_v48, %v999_v63 }
0x128f   :  { %v1032_v17 = vsel %vm204_vm8, %v1012_v15, 0.0 }
0x12bf   :  { %v959_v37 = vpop.permute.xlu2 %958 }
0x12c0   :  { %v960_v42 = vrot.slane %v959_v37, 6 }
0x12c2   :  { %v961_v43 = vsel %vm92_vm1, %v960_v42, %v959_v37  ;;  %vm1049_vm1 = vcmask 1024  }
0x12c3   :  { %v963_v44 = vmul.f32 %v961_v43, %v941_v4 }
0x12c5   :  { %965 = vst [vmem:[#allocation1] ss:$4 sm:$0xff] %v963_v44 }
0x12c7   :  { %v309_v28 = vpop.permute.xlu2 %308 }
0x12c8   :  { %v312_v45 = vsel %vm201_vm6, %v309_v28, %v311_v27 }
0x12c9   :  { %315 = vst.msk [vmem:[#allocation2 + $0x2] sm:$0x3] %vm204_vm8, %v312_v45 }
0x12cc   :  { %v966_v12 = vld.sshfl [vmem:[#allocation1] sm:$0xff pattern:$0x73625140]  ;;  %v967_v46 = vld.sshfl [vmem:[#allocation1 + $0x8] sm:$0xff pattern:$0x73625140] }
0x12cd   :  { %968 = vrot.lane.b32.xlu2 %v966_v12, %s1352_s5  ;;  %976 = vst [vmem:[#allocation1] ss:$4 sm:$0xff] %v963_v44 }
0x12cf   :  { %v421_v47 = vpop.permute.xlu2 %420 }
0x12d0   :  { %v422_v26 = vsel %vm201_vm6, %v419_v56, %v421_v47  ;;  %v994_v51 = vld [vmem:[#allocation2 + $0x2] sm:$0x3] }
0x12d1   :  { %425 = vst.msk [vmem:[#allocation2 + $0x4] sm:$0x3] %vm204_vm8, %v422_v26  ;;  %v1007_v52 = vmul.f32 %v1149_v48, %v994_v51 }
0x12d3   :  { %v1017_v53 = vsel %vm204_vm8, %v1007_v52, 0.0 }
0x12d4   :  { %1018 = vadd.xlane.f32.xlu0 %v1017_v53  ;;  %v977_v54 = vld.sshfl [vmem:[#allocation1] sm:$0xff pattern:$0x73625140]  ;;  %v978_v57 = vld.sshfl [vmem:[#allocation1 + $0x8] sm:$0xff pattern:$0x73625140] }
0x12d5   :  { %987 = vst [vmem:[#allocation1] ss:$4 sm:$0xff] %v955_v9 }
0x12d7   :  { %v639_v58 = vpop.permute.xlu2 %638 }
0x12d8   :  { %v642_v59 = vsel %vm201_vm6, %v639_v58, %v641_v35  ;;  %v995_v60 = vld [vmem:[#allocation2 + $0x4] sm:$0x3] }
0x12d9   :  { %645 = vst.msk [vmem:[#allocation2 + $0x8] sm:$0x3] %vm204_vm8, %v642_v59  ;;  %v1008_v61 = vmul.f32 %v1149_v48, %v995_v60 }
0x12db   :  { %v1020_v62 = vsel %vm204_vm8, %v1008_v61, 0.0 }
0x12dc   :  { %1021 = vadd.xlane.f32.xlu1 %v1020_v62  ;;  %v988_v30 = vld.sshfl [vmem:[#allocation1] sm:$0xff pattern:$0x73625140] }
0x12df   :  { %v751_v0 = vpop.permute.xlu2 %750 }
0x12e0   :  { %v752_v16 = vsel %vm201_vm6, %v749_v36, %v751_v0  ;;  %v997_v24 = vld [vmem:[#allocation2 + $0x8] sm:$0x3] }
0x12e1   :  { %755 = vst.msk [vmem:[#allocation2 + $0xa] sm:$0x3] %vm204_vm8, %v752_v16  ;;  %v1010_v29 = vmul.f32 %v1149_v48, %v997_v24 }
0x12e3   :  { %v1026_v31 = vsel %vm204_vm8, %v1010_v29, 0.0 }
0x12e4   :  { %1033 = vadd.xlane.f32.xlu1 %v1032_v17 }
0x12e8   :  { %970 = vrot.lane.b32.xlu0 %v967_v46, %s1352_s5  ;;  %v998_v49 = vld [vmem:[#allocation2 + $0xa] sm:$0x3] }
0x12e9   :  { %v1011_v32 = vmul.f32 %v1149_v48, %v998_v49 }
0x12eb   :  { %v1029_v33 = vsel %vm204_vm8, %v1011_v32, 0.0 }
0x12f6   :  { %1015 = vadd.xlane.f32.xlu2 %v1014_v20 }
0x12fd   :  { %979 = vrot.lane.b32.xlu1 %v977_v54, %s1352_s5 }
0x12fe   :  { %1024 = vadd.xlane.f32.xlu2 %v1023_v23 }
0x1305   :  { %989 = vrot.lane.b32.xlu1 %v988_v30, %s1353_s27 }
0x1306   :  { %1027 = vadd.xlane.f32.xlu2 %v1026_v31 }
0x1312   :  { %1030 = vadd.xlane.f32.xlu0 %v1029_v33 }
0x1326   :  { %981 = vrot.lane.b32.xlu0 %v978_v57, %s1352_s5 }
0x1327   :  { %v969_v5 = vpop.permute.xlu2 %968 }
0x1347   :  { %v1019_v55 = vpop.xlane.xlu0 %1018 }
0x1348   :  { %v1042_v1 = vadd.f32 %v1150_v38, %v1019_v55 }
0x134a   :  { %1051 = vst.msk [vmem:[%s1794_s6 + $0x2] sm:$0x3] %vm1049_vm1, %v1042_v1 }
0x134f   :  { %v1022_v14 = vpop.xlane.xlu1 %1021 }
0x1350   :  { %v1043_v2 = vadd.f32 %v1150_v38, %v1022_v14 }
0x1352   :  { %1052 = vst.msk [vmem:[%s1794_s6 + $0x4] sm:$0x3] %vm1049_vm1, %v1043_v2 }
0x1357   :  { %v1034_v3 = vpop.xlane.xlu1 %1033 }
0x1358   :  { %v1047_v4 = vadd.f32 %v1150_v38, %v1034_v3 }
0x135a   :  { %1056 = vst.msk [vmem:[%s1794_s6 + $0xc] sm:$0x3] %vm1049_vm1, %v1047_v4  ;;  %v971_v6 = vpop.permute.xlu0 %970 }
0x135b   :  { %v972_v7 = vsel %vm201_vm6, %v969_v5, %v971_v6 }
0x135c   :  { %975 = vst.msk [vmem:[#allocation2 + $0xe] sm:$0x3] %vm204_vm8, %v972_v7 }
0x1363   :  { %v1000_v8 = vld [vmem:[#allocation2 + $0xe] sm:$0x3] }
0x1364   :  { %v1013_v9 = vmul.f32 %v1149_v48, %v1000_v8 }
0x1366   :  { %v1035_v10 = vsel %vm204_vm8, %v1013_v9, 0.0 }
0x1367   :  { %1036 = vadd.xlane.f32.xlu2 %v1035_v10 }
0x1369   :  { %v1016_v50 = vpop.xlane.xlu2 %1015 }
0x136a   :  { %v1041_v11 = vadd.f32 %v1150_v38, %v1016_v50 }
0x136c   :  { %1050 = vst.msk [vmem:[%s1794_s6] sm:$0x3] %vm1049_vm1, %v1041_v11 }
0x136f   :  { %v980_v27 = vpop.permute.xlu1 %979 }
0x1371   :  { %v1025_v56 = vpop.xlane.xlu2 %1024 }
0x1372   :  { %v1044_v25 = vadd.f32 %v1150_v38, %v1025_v56 }
0x1374   :  { %1053 = vst.msk [vmem:[%s1794_s6 + $0x6] sm:$0x3] %vm1049_vm1, %v1044_v25 }
0x1377   :  { %v990_v34 = vpop.permute.xlu1 %989 }
0x1378   :  { %992 = vst.msk [vmem:[#allocation11] sm:$0x3] %vm204_vm8, %v990_v34 }
0x1379   :  { %v1028_v13 = vpop.xlane.xlu2 %1027  ;;  %1081 = dma.vmem_to_hbm [thread:$0]  %s1077_s15, 32, %s1079_s17, [#allocation12]  }
0x137a   :  { %v1045_v35 = vadd.f32 %v1150_v38, %v1028_v13 }
0x137c   :  { %1054 = vst.msk [vmem:[%s1794_s6 + $0x8] sm:$0x3] %vm1049_vm1, %v1045_v35 }
0x1385   :  { %v1031_v36 = vpop.xlane.xlu0 %1030 }
0x1386   :  { %v1046_v39 = vadd.f32 %v1150_v38, %v1031_v36 }
0x1388   :  { %1055 = vst.msk [vmem:[%s1794_s6 + $0xa] sm:$0x3] %vm1049_vm1, %v1046_v39 }
0x1398   :  { %v982_v40 = vpop.permute.xlu0 %981 }
0x1399   :  { %v983_v41 = vsel %vm201_vm6, %v980_v27, %v982_v40 }
0x139a   :  { %985 = vst.msk [vmem:[#allocation10] sm:$0x3] %vm204_vm8, %v983_v41 }
0x139b   :  { %1070 = dma.vmem_to_hbm [thread:$0]  %s1066_s23, 32, %s1068_s4, [#allocation6]  }
0x13da   :  { %v1037_v37 = vpop.xlane.xlu2 %1036 }
0x13db   :  { %v1048_v42 = vadd.f32 %v1150_v38, %v1037_v37 }
0x13dd   :  { %1057 = vst.msk [vmem:[%s1794_s6 + $0xe] sm:$0x3] %vm1049_vm1, %v1048_v42 }
0x13de   :  { %1339 = dma.done.wait [#allocation6], 32  }
0x13df   :  { %1340 = vsyncadd [#allocation6], 4294967264 }
0x13e0   :  { %1341 = dma.done.wait [#allocation12], 32  }
0x13e1   :  { %1342 = vsyncadd [#allocation12], 4294967264 }
0x13e2   :  { %1092 = vsyncpa [#allocation5], 1 }
0x13e3   :  { %1093 = vsyncpa [#allocation8], 1 }
0x13e4   :  { %1094 = vsyncpa [#allocation6], 1 }
0x13e5   :  { %1095 = vsyncpa [#allocation12], 1 }

</bundles_post_ra>
